<compile_context>
chip_gen: v6e
topology: v6e:2x2x1
jax: 0.10.0
libtpu: 0.0.40
codegen_flags: <defaults>
</compile_context>

<pallas_src>
import jax
import jax.numpy as jnp
import numpy as np
from jax.experimental import pallas as pl
from jax.experimental.pallas import tpu as pltpu


def _resgcn_fused_kernel(x_ref, b_ref, sh1_ref, ct_ref, sh2_ref, o_ref):
    """One batch tile per grid step.

    x_ref  : (1, nb, Cin*L)       f32, lane index = c*L + t*V + v
    b_ref  : (Cin*L, Cout*L)      folded scn operator (BN1-scaled), f32 or bf16
    sh1_ref: (1, Cout*L)          folded gcn bias (through aggregation) + BN1 shift
    ct_ref : (Cout*L, Cout*L)     folded tcn operator (BN2-scaled), f32 or bf16
    sh2_ref: (1, Cout*L)          folded tcn bias + BN2 shift
    o_ref  : (1, nb, Cout*L)
    """
    x = x_ref[0]                                                   # (nb, Cin*L) f32

    # ---- scn: (1x1 conv o graph aggregation o BN1) as one lane-dense matmul ----
    y = jnp.dot(x.astype(b_ref.dtype), b_ref[...],
                preferred_element_type=jnp.float32)                # (nb, Cout*L)
    y = jnp.maximum(y + sh1_ref[...], 0.0)                         # BN1 shift + ReLU (f32)

    # ---- tcn: (temporal conv o BN2) as a second matmul; identity residual ----
    z = jnp.dot(y.astype(ct_ref.dtype), ct_ref[...],
                preferred_element_type=jnp.float32)                # (nb, Cout*L)
    z = z + sh2_ref[...] + x                                       # shift + residual (f32)
    o_ref[0] = jnp.maximum(z, 0.0).astype(o_ref.dtype)


def resgcn_module_forward(x_nchw, A, params, *, mxu_dtype=jnp.float32,
                          max_rows_per_step=512):
    """x_nchw: (N, C, T, V) float32, A: (K, V, V).  Returns (N, C, T, V)."""
    N, Cin, T, V = x_nchw.shape
    L = T * V

    Aeff = (A * params['edge']).astype(jnp.float32)                # (K, V, V)
    K = Aeff.shape[0]
    wg = params['gcn_w'][:, :, 0, 0].astype(jnp.float32)           # (K*Cout, Cin)
    bg = params['gcn_b'].astype(jnp.float32)                       # (K*Cout,)
    Cout = wg.shape[0] // K
    wt = params['tcn_w'][:, :, :, 0].astype(jnp.float32)           # (Cout, Cout, TW)
    bt = params['tcn_b'].astype(jnp.float32)                       # (Cout,)
    TW = wt.shape[2]
    pad = (TW - 1) // 2

    def fold_bn(gamma, beta, mean, var, eps=1e-5):
        s = gamma / jnp.sqrt(var + eps)
        return s.astype(jnp.float32), (beta - mean * s).astype(jnp.float32)

    s1, b1 = fold_bn(*params['bn1'])                               # (Cout,)
    s2, b2 = fold_bn(*params['bn2'])

    # ---------- host-side constant folding (weight-only math) ----------
    # scn operator: B[(ci,t,v),(co,t',w)] = s1[co] * sum_k wg[k,co,ci] δ_tt' Aeff[k,v,w]
    wg_s = wg.reshape(K, Cout, Cin) * s1[None, :, None]            # (K, Cout, Cin)
    eyeT = jnp.eye(T, dtype=jnp.float32)
    Bop = jnp.einsum('koc,tu,kvw->ctvouw', wg_s, eyeT, Aeff)       # (Cin,T,V,Cout,T,V)
    Bop = Bop.reshape(Cin * L, Cout * L).astype(mxu_dtype)
    # gcn bias pushed through the aggregation and BN1 -> additive shift.
    b_agg = jnp.einsum('kvw,kc->cw', Aeff, bg.reshape(K, Cout))    # (Cout, V)
    shift1 = s1[:, None] * b_agg + b1[:, None]                     # (Cout, V)
    shift1_full = jnp.tile(shift1[:, None, :], (1, T, 1)).reshape(1, Cout * L)

    # tcn operator: Ct[(ci,t,v),(co,t',w)] = s2[co] wt[co,ci,t-t'+pad] δ_vw [valid]
    wt_s = np.asarray(wt) * np.asarray(s2)[:, None, None]          # (Cout, Cin, TW)
    tmask = np.zeros((T, T, TW), np.float32)                       # 'same' padding window
    for t in range(T):
        for tp in range(T):
            dt = t - tp + pad
            if 0 <= dt < TW:
                tmask[t, tp, dt] = 1.0
    Ctop = np.einsum('ocd,tud,vw->ctvouw', wt_s, tmask,
                     np.eye(V, dtype=np.float32))                  # (Cout,T,V,Cout,T,V)
    Ctop = jnp.asarray(Ctop.reshape(Cout * L, Cout * L)).astype(mxu_dtype)
    shift2_full = jnp.broadcast_to((s2 * bt + b2)[:, None],
                                   (Cout, L)).reshape(1, Cout * L)

    CL_in, CL_out = Cin * L, Cout * L

    # ---------- batch tiling: merge batch onto MXU rows, few grid steps ----------
    # Keep 2 independent steps when the batch allows so v7x's two TensorCores
    # both get work under dimension_semantics=("parallel",); extra step cost on
    # v5e/v6e is only ~0.35 us.  Large batches tile at max_rows_per_step rows.
    if N <= max_rows_per_step:
        steps = 2 if (N % 2 == 0 and N >= 2) else 1
        nb = N // steps
    else:
        nb = max_rows_per_step
        steps = pl.cdiv(N, nb)
    Npad = nb * steps

    x2 = x_nchw.reshape(N, CL_in).astype(jnp.float32)
    if Npad != N:
        x2 = jnp.pad(x2, ((0, Npad - N), (0, 0)))
    x3 = x2.reshape(steps, nb, CL_in)

    op_bytes = jnp.dtype(mxu_dtype).itemsize
    cost = pl.CostEstimate(
        flops=int(2 * Npad * CL_in * CL_out + 2 * Npad * CL_out * CL_out),
        transcendentals=0,
        bytes_accessed=int(4 * Npad * (CL_in + CL_out)
                           + op_bytes * (CL_in * CL_out + CL_out * CL_out)
                           + 4 * 2 * CL_out),
    )

    out = pl.pallas_call(
        _resgcn_fused_kernel,
        out_shape=jax.ShapeDtypeStruct((steps, nb, CL_out), jnp.float32),
        grid_spec=pltpu.PrefetchScalarGridSpec(
            num_scalar_prefetch=0,
            grid=(steps,),
            in_specs=[
                pl.BlockSpec((1, nb, CL_in), lambda i: (i, 0, 0)),      # x rows
                pl.BlockSpec((CL_in, CL_out), lambda i: (0, 0)),        # scn operator
                pl.BlockSpec((1, CL_out), lambda i: (0, 0)),            # scn shift
                pl.BlockSpec((CL_out, CL_out), lambda i: (0, 0)),       # tcn operator
                pl.BlockSpec((1, CL_out), lambda i: (0, 0)),            # tcn shift
            ],
            out_specs=pl.BlockSpec((1, nb, CL_out), lambda i: (i, 0, 0)),
        ),
        compiler_params=pltpu.CompilerParams(
            dimension_semantics=("parallel",)),                        # steps independent
        cost_estimate=cost,
    )(x3, Bop, shift1_full, Ctop, shift2_full)

    out = out.reshape(Npad, CL_out)[:N]
    return out.reshape(N, Cout, T, V)


def resgcn_reference(x, A, params):
    """Pure-JAX reference mirroring the PyTorch forward (eval-mode BN)."""
    N, Cin, T, V = x.shape
    Aeff = A * params['edge']
    wg, bg = params['gcn_w'], params['gcn_b']
    K = Aeff.shape[0]
    Cout = wg.shape[0] // K

    def bn(v, p, eps=1e-5):
        g, b, m, var = p
        return ((v - m[None, :, None, None]) / jnp.sqrt(var[None, :, None, None] + eps)
                * g[None, :, None, None] + b[None, :, None, None])

    g = jnp.einsum('nctv,oc->notv', x, wg[:, :, 0, 0]) + bg[None, :, None, None]
    g = g.reshape(N, K, Cout, T, V)
    y = jnp.einsum('nkctv,kvw->nctw', g, Aeff)
    y = jax.nn.relu(bn(y, params['bn1']))

    wt, bt = params['tcn_w'], params['tcn_b']
    TW = wt.shape[2]
    pad = (TW - 1) // 2
    ypad = jnp.pad(y, ((0, 0), (0, 0), (pad, pad), (0, 0)))
    z = jnp.zeros((N, Cout, T, V), jnp.float32) + bt[None, :, None, None]
    for dt in range(TW):
        z = z + jnp.einsum('nctv,oc->notv', ypad[:, :, dt:dt + T, :], wt[:, :, dt, 0])
    z = bn(z, params['bn2'])
    return jax.nn.relu(z + x)            # module residual = identity (stride=1, Cin==Cout)


if __name__ == "__main__":
    key = jax.random.PRNGKey(0)
    ks = jax.random.split(key, 16)

    # Shapes consistent with the module: N=2, C_in=C_out=4, T=8 frames, V=16 joints,
    # kernel_size=[9, 2] -> temporal_window=9, max_graph_distance=2 -> K=3.
    N, C, T, V = 2, 4, 8, 16
    TW, MGD = 9, 2
    K = MGD + 1

    x = jax.random.normal(ks[0], (N, C, T, V), jnp.float32)
    A = jax.random.uniform(ks[1], (K, V, V), jnp.float32)

    params = {
        'edge':  jnp.ones((K, V, V), jnp.float32),                       # nn.Parameter(ones_like(A))
        'gcn_w': jax.random.normal(ks[2], (K * C, C, 1, 1), jnp.float32) * 0.3,
        'gcn_b': jax.random.normal(ks[3], (K * C,), jnp.float32) * 0.1,
        'bn1': (jax.random.uniform(ks[4], (C,), minval=0.5, maxval=1.5),
                jax.random.normal(ks[5], (C,)) * 0.1,
                jax.random.normal(ks[6], (C,)) * 0.1,
                jax.random.uniform(ks[7], (C,), minval=0.5, maxval=1.5)),
        'tcn_w': jax.random.normal(ks[8], (C, C, TW, 1), jnp.float32) * 0.2,
        'tcn_b': jax.random.normal(ks[9], (C,), jnp.float32) * 0.1,
        'bn2': (jax.random.uniform(ks[10], (C,), minval=0.5, maxval=1.5),
                jax.random.normal(ks[11], (C,)) * 0.1,
                jax.random.normal(ks[12], (C,)) * 0.1,
                jax.random.uniform(ks[13], (C,), minval=0.5, maxval=1.5)),
    }

    ref = resgcn_reference(x, A, params)

    # f32 MXU-operand path (works on all generations; tight tolerance).
    out = resgcn_module_forward(x, A, params)
    out = jax.block_until_ready(out)
    assert out.shape == (N, C, T, V) and out.dtype == jnp.float32
    np.testing.assert_allclose(np.asarray(out), np.asarray(ref), rtol=2e-4, atol=2e-4)

    # bf16 MXU-operand path (native MXU dtype on v6e/v7x; elementwise stays f32).
    out_bf16 = resgcn_module_forward(x, A, params, mxu_dtype=jnp.bfloat16)
    out_bf16 = jax.block_until_ready(out_bf16)
    np.testing.assert_allclose(np.asarray(out_bf16), np.asarray(ref), rtol=5e-2, atol=1e-1)

    print("KERNEL_OK")
</pallas_src>

<mosaic_0001>
module attributes {stable_mosaic.version = 11 : i64} {
  func.func @_resgcn_fused_kernel(%arg0: i32, %arg1: memref<1x1x512xf32, #tpu.memory_space<vmem>>, %arg2: memref<512x512xf32, #tpu.memory_space<vmem>>, %arg3: memref<1x512xf32, #tpu.memory_space<vmem>>, %arg4: memref<512x512xf32, #tpu.memory_space<vmem>>, %arg5: memref<1x512xf32, #tpu.memory_space<vmem>>, %arg6: memref<1x1x512xf32, #tpu.memory_space<vmem>>) attributes {dimension_semantics = [#tpu.dimension_semantics<parallel>], iteration_bounds = array<i64: 2>, scalar_prefetch = 0 : i64, scratch_operands = 0 : i64, tpu.core_type = #tpu.core_type<tc>, window_params = [{transform_indices = @transform_0, window_bounds = array<i64: 1, 1, 512>}, {pipeline_mode = #tpu.pipeline_mode<synchronous>, transform_indices = @transform_1, window_bounds = array<i64: 512, 512>}, {pipeline_mode = #tpu.pipeline_mode<synchronous>, transform_indices = @transform_2, window_bounds = array<i64: 1, 512>}, {pipeline_mode = #tpu.pipeline_mode<synchronous>, transform_indices = @transform_3, window_bounds = array<i64: 512, 512>}, {pipeline_mode = #tpu.pipeline_mode<synchronous>, transform_indices = @transform_4, window_bounds = array<i64: 1, 512>}, {transform_indices = @transform_5, window_bounds = array<i64: 1, 1, 512>}]} {
    %c0 = arith.constant 0 : index
    %c0_0 = arith.constant 0 : index
    %c0_1 = arith.constant 0 : index
    %0 = vector.load %arg1[%c0, %c0_0, %c0_1] : memref<1x1x512xf32, #tpu.memory_space<vmem>>, vector<1x1x512xf32>
    %1 = vector.shape_cast %0 : vector<1x1x512xf32> to vector<1x512xf32>
    %c0_2 = arith.constant 0 : index
    %c0_3 = arith.constant 0 : index
    %2 = vector.load %arg2[%c0_2, %c0_3] : memref<512x512xf32, #tpu.memory_space<vmem>>, vector<512x512xf32>
    %cst = arith.constant dense<0.000000e+00> : vector<1x512xf32>
    %3 = tpu.matmul %1, %2, %cst {dimension_numbers = #tpu.dot_dimension_numbers<[1], [0], [0], [1], [0, 0, 1, 1], [], []>} : vector<1x512xf32>, vector<512x512xf32>, vector<1x512xf32> -> vector<1x512xf32>
    %c0_4 = arith.constant 0 : index
    %c0_5 = arith.constant 0 : index
    %4 = vector.load %arg3[%c0_4, %c0_5] : memref<1x512xf32, #tpu.memory_space<vmem>>, vector<1x512xf32>
    %5 = arith.addf %3, %4 : vector<1x512xf32>
    %cst_6 = arith.constant 0.000000e+00 : f32
    %6 = vector.broadcast %cst_6 : f32 to vector<1x512xf32>
    %7 = arith.maximumf %5, %6 : vector<1x512xf32>
    %c0_7 = arith.constant 0 : index
    %c0_8 = arith.constant 0 : index
    %8 = vector.load %arg4[%c0_7, %c0_8] : memref<512x512xf32, #tpu.memory_space<vmem>>, vector<512x512xf32>
    %cst_9 = arith.constant dense<0.000000e+00> : vector<1x512xf32>
    %9 = tpu.matmul %7, %8, %cst_9 {dimension_numbers = #tpu.dot_dimension_numbers<[1], [0], [0], [1], [0, 0, 1, 1], [], []>} : vector<1x512xf32>, vector<512x512xf32>, vector<1x512xf32> -> vector<1x512xf32>
    %c0_10 = arith.constant 0 : index
    %c0_11 = arith.constant 0 : index
    %10 = vector.load %arg5[%c0_10, %c0_11] : memref<1x512xf32, #tpu.memory_space<vmem>>, vector<1x512xf32>
    %11 = arith.addf %9, %10 : vector<1x512xf32>
    %12 = arith.addf %11, %1 : vector<1x512xf32>
    %cst_12 = arith.constant 0.000000e+00 : f32
    %13 = vector.broadcast %cst_12 : f32 to vector<1x512xf32>
    %14 = arith.maximumf %12, %13 : vector<1x512xf32>
    %c0_13 = arith.constant 0 : index
    %c0_14 = arith.constant 0 : index
    %c0_15 = arith.constant 0 : index
    %15 = vector.load %arg6[%c0_13, %c0_14, %c0_15] : memref<1x1x512xf32, #tpu.memory_space<vmem>>, vector<1x1x512xf32>
    %16 = vector.shape_cast %15 : vector<1x1x512xf32> to vector<1x512xf32>
    %17 = vector.shape_cast %14 : vector<1x512xf32> to vector<1x1x512xf32>
    tpu.vector_store %arg6[%c0_13, %c0_14, %c0_15], %17 {strides = array<i32>} : memref<1x1x512xf32, #tpu.memory_space<vmem>>, vector<1x1x512xf32>,
    return
  }
  func.func @transform_0(%arg0: i32) -> (i32, i32, i32) {
    %c0_i32 = arith.constant 0 : i32
    %c0_i32_0 = arith.constant 0 : i32
    %c0_i32_1 = arith.constant 0 : i32
    return %arg0, %c0_i32, %c0_i32_0 : i32, i32, i32
  }
  func.func @transform_1(%arg0: i32) -> (i32, i32) {
    %c0_i32 = arith.constant 0 : i32
    %c0_i32_0 = arith.constant 0 : i32
    %c0_i32_1 = arith.constant 0 : i32
    return %c0_i32, %c0_i32_0 : i32, i32
  }
  func.func @transform_2(%arg0: i32) -> (i32, i32) {
    %c0_i32 = arith.constant 0 : i32
    %c0_i32_0 = arith.constant 0 : i32
    %c0_i32_1 = arith.constant 0 : i32
    return %c0_i32, %c0_i32_0 : i32, i32
  }
  func.func @transform_3(%arg0: i32) -> (i32, i32) {
    %c0_i32 = arith.constant 0 : i32
    %c0_i32_0 = arith.constant 0 : i32
    %c0_i32_1 = arith.constant 0 : i32
    return %c0_i32, %c0_i32_0 : i32, i32
  }
  func.func @transform_4(%arg0: i32) -> (i32, i32) {
    %c0_i32 = arith.constant 0 : i32
    %c0_i32_0 = arith.constant 0 : i32
    %c0_i32_1 = arith.constant 0 : i32
    return %c0_i32, %c0_i32_0 : i32, i32
  }
  func.func @transform_5(%arg0: i32) -> (i32, i32, i32) {
    %c0_i32 = arith.constant 0 : i32
    %c0_i32_0 = arith.constant 0 : i32
    %c0_i32_1 = arith.constant 0 : i32
    return %arg0, %c0_i32, %c0_i32_0 : i32, i32, i32
  }
}

</mosaic_0001>

<bundles_post_ra>
// kernel: tpu_custom_call.1
= control target key start
LH: loop header
LB: loop body
LE: loop exit
PB: predicated region body
PF: predicated region fallthrough
CT: control target
= control target key end

     0   :  { %10 = vsyncpa [#allocation3], 0  ;;  %s2165_s0 = inlined_call_operand.hbm [shape: f32[2,1,512], index: 0, kind: input, shape index: {}]   ;;  %s2166_s1 = inlined_call_operand.hbm [shape: f32[512,512], index: 1, kind: input, shape index: {}]   ;;  %s2167_s2 = inlined_call_operand.hbm [shape: f32[1,512], index: 2, kind: input, shape index: {}]   ;;  %s2168_s3 = inlined_call_operand.hbm [shape: f32[512,512], index: 3, kind: input, shape index: {}]   ;;  %s2169_s4 = inlined_call_operand.vmem [shape: f32[1,512], index: 4, kind: input, shape index: {}]   ;;  %s2170_s5 = inlined_call_operand.hbm [shape: f32[2,1,512], index: 5, kind: output, shape index: {}]  }
   0x1   :  { %12 = vsyncpa [#allocation3 + $0x1], 0 }
   0x2   :  { %13 = vsyncpa [#allocation6], 0 }
   0x3   :  { %14 = vsyncpa [#allocation9], 0 }
   0x4   :  { %15 = vsyncpa [#allocation4], 0 }
   0x5   :  { %17 = vsyncpa [#allocation4 + $0x1], 0  ;;  %s1909_s18 = smov 0   ;;  %s1911_s19 = smov 0  }
   0x6   :  { %s1913_s20 = smov 0   ;;  %s1915_s21 = smov 0  }
   0x7 LB: > { %s1930_s22 = sadd.s32 4294967295, %s1869_s21   ;;  %s1589_s23 = sadd.s32 4294967294, %s1869_s21   ;;  %s1869_s21 = sphi %s1915_s21, %s2194_s21   ;;  %s1865_s20 = sphi %s1913_s20, %s2193_s20   ;;  %s1861_s19 = sphi %s1911_s19, %s2192_s19   ;;  %s1857_s18 = sphi %s1909_s18, %s2191_s18  }
   0x8   : > { %p43_p0 = scmp.ne.s32.totalorder %s1861_s19, %s1857_s18  ;;  %p2171_p1 = scmp.eq.s32.totalorder %s1930_s22, 0 }
   0x9   : > { %p157_p3 = scmp.eq.s32.totalorder %s1589_s23, 1  ;;  %p1590_p5 = scmp.ge.s32.totalorder %s1869_s21, 1 }
   0xa   : > { %p1939_p4 = por %p2171_p1, %p43_p0  ;;  %p164_p7 = scmp.lt.s32.totalorder %s1869_s21, 3 }
   0xb   : > { %p1944_p6 = por %p157_p3, %p43_p0  ;;  %s1871_s27 = smov [#allocation5]  }
   0xc   : > { %s2175_s24 = scalar_select %p1939_p4, 1, 0 }
   0xd   : > { %s2176_s25 = scalar_select %p1944_p6, 1, 0 }
   0xe   : > { %p1949_p8 = pnand %p1590_p5, %p164_p7  ;;  %s176_s28 = sshll.u32 %s1871_s27, 4  ;;  %s177_s28 = int_to_ptr.vmem [resolvable:$true] %s176_s28 }
   0xf   : > { %s1872_s30 = smov [#allocation7]   ;;  %s1873_s7 = smov [#allocation8]  }
  0x10   : > { %s2177_s26 = scalar_select %p1949_p8, 1, 0 }
  0x11   : > { %p1627_p9 = pneg %p1949_p8  ;;  %s190_s6 = sshll.u32 %s1872_s30, 4  ;;  %s191_s6 = int_to_ptr.vmem [resolvable:$true] %s190_s6 }
  0x12   : > { %s200_s8 = sshll.u32 %s1873_s7, 4  ;;  %s1702_s9 = scalar_lea.vmem %s177_s28, 32768  ;;  %s201_s8 = int_to_ptr.vmem [resolvable:$true] %s200_s8 }
  0x13   : > { %p1958_p11 = pnand %p1627_p9, %p2171_p1  ;;  %p1703_p13 = scmp.ne.s32.totalorder %s177_s28, %s1702_s9 }
  0x14   : > { %p1710_p5 = scmp.lt.s32.totalorder %s177_s28, %s177_s28  ;;  %p1711_p7 = scmp.lt.s32.totalorder %s1702_s9, %s1702_s9 }
  0x15   : > { %p1693_p12 = pneg %p1958_p11 }
  0x16   : > { %p1712_p9 = por %p1711_p7, %p1710_p5 }
  0x17   : > { %p1705_p0 = pnand %p1703_p13, %p1693_p12 }
  0x19   : > { %p1706_p3 = pneg %p1705_p0 }
  0x1b   : > { %p1713_p10 = pnand %p1712_p9, %p1706_p3 }
  0x1d   : > { %1716 = shalt.err (!%p1713_p10)
}
  0x1e   : > { %s1874_s10 = smov 512   ;;  %s1875_s11 = smov 32  }
  0x1f   : > { %1630 = dma.hbm_to_vmem [thread:$0]  (!%p1958_p11), %s2166_s1, 32768, %s177_s28, [#allocation6], %s1874_s10, %s1874_s10, %s1875_s11  }
  0x20   : > { %s1728_s14 = scalar_lea.vmem %s191_s6, 64  ;;  %p1736_p2 = scmp.lt.s32.totalorder %s191_s6, %s191_s6 }
  0x21   : > { %p1729_p1 = scmp.ne.s32.totalorder %s191_s6, %s1728_s14  ;;  %p1737_p6 = scmp.lt.s32.totalorder %s1728_s14, %s1728_s14 }
  0x23   : > { %p1731_p13 = pnand %p1729_p1, %p1693_p12  ;;  %p1738_p5 = por %p1737_p6, %p1736_p2 }
  0x25   : > { %p1732_p0 = pneg %p1731_p13 }
  0x27   : > { %p1739_p3 = pnand %p1738_p5, %p1732_p0 }
  0x29   : > { %1742 = shalt.err (!%p1739_p3)
}
  0x2a   : > { %1633 = dma.hbm_to_vmem [thread:$0]  (!%p1958_p11), %s2167_s2, 64, %s191_s6, [#allocation6]  }
  0x2b   : > { %s1754_s17 = scalar_lea.vmem %s201_s8, 32768  ;;  %p1762_p9 = scmp.lt.s32.totalorder %s201_s8, %s201_s8 }
  0x2c   : > { %p1755_p10 = scmp.ne.s32.totalorder %s201_s8, %s1754_s17  ;;  %p1763_p13 = scmp.lt.s32.totalorder %s1754_s17, %s1754_s17 }
  0x2e   : > { %p1757_p7 = pnand %p1755_p10, %p1693_p12  ;;  %p1764_p4 = por %p1763_p13, %p1762_p9 }
  0x30   : > { %p1758_p1 = pneg %p1757_p7 }
  0x32   : > { %p1765_p2 = pnand %p1764_p4, %p1758_p1 }
  0x34   : > { %1768 = shalt.err (!%p1765_p2)
}
  0x35   : > { %1636 = dma.hbm_to_vmem [thread:$0]  (!%p1958_p11), %s2168_s3, 32768, %s201_s8, [#allocation9], %s1874_s10, %s1874_s10, %s1875_s11  }
  0x36   : > { %s1989_s28 = sadd.s32 1, %s1869_s21   ;;  %s30_s29 = sadd.s32 1, %s1865_s20 }
  0x37   : > { %s27_s30 = ssub.s32 %s1869_s21, %s1989_s28  ;;  %p37_p6 = scmp.ne.s32.totalorder %s1865_s20, %s1861_s19 }
  0x38   : > { %p28_p4 = scmp.eq.s32.totalorder %s27_s30, 0  ;;  %p38_p12 = scmp.eq.s32.totalorder %s1869_s21, 0 }
  0x39   : > { %p1648_p0 = scmp.lt.s32.totalorder %s1869_s21, 2  ;;  %p2179_p3 = scmp.eq.s32.totalorder %s1930_s22, 1 }
  0x3a   : > { %s1999_s6 = scalar_select %p28_p4, %s1865_s20, %s30_s29  }
  0x3b   : > { %p39_p5 = por %p38_p12, %p37_p6  ;;  %p2003_p10 = por %p2179_p3, %p37_p6 }
  0x3c   : > { %s217_s9 = sand.u32 1, %s1865_s20   ;;  %s1609_s12 = sshll.u32 %s1869_s21, 6 }
  0x3d   : > { %s2180_s7 = scalar_select %p2003_p10, 1, 0 }
  0x3e   : > { %s1595_s8 = sshll.u32 %s217_s9, 2  ;;  %s2012_s13 = scalar_lea.hbm %s2165_s0, %s1609_s12 }
  0x3f   : > { %s221_s14 = scalar_lea.vmem [#allocation2], %s1595_s8  ;;  %p2014_p11 = pnand %p1648_p0, %p39_p5 }
  0x40   : > { %s229_s15 = sshll.u32 %s221_s14, 4  ;;  %s218_s17 = scalar_lea.sflag [#allocation3], %s217_s9  ;;  %s230_s15 = int_to_ptr.vmem [resolvable:$true] %s229_s15 }
  0x41   : > { %s1769_s23 = scalar_lea.hbm %s2012_s13, 64  ;;  %p1771_p1 = pneg %p2014_p11 }
  0x42   : > { %p1770_p7 = scmp.ne.s32.totalorder %s2012_s13, %s1769_s23  ;;  %s1774_s29 = scalar_lea.hbm %s2165_s0, 128 }
  0x43   : > { %p1775_p2 = scmp.lt.s32.totalorder %s2012_s13, %s2165_s0  ;;  %p1776_p4 = scmp.lt.s32.totalorder %s1774_s29, %s1769_s23 }
  0x44   : > { %p1772_p9 = pnand %p1771_p1, %p1770_p7 }
  0x45   : > { %p1777_p6 = por %p1776_p4, %p1775_p2 }
  0x46   : > { %p1773_p13 = pneg %p1772_p9 }
  0x48   : > { %p1778_p12 = pnand %p1777_p6, %p1773_p13 }
  0x4a   : > { %1781 = shalt.err (!%p1778_p12)
}
  0x4b   : > { %s1782_s10 = scalar_lea.vmem %s230_s15, 64  ;;  %s1876_s9 = smov [#allocation2]  }
  0x4c   : > { %p1783_p0 = scmp.ne.s32.totalorder %s230_s15, %s1782_s10  ;;  %s1787_s11 = sshll.u32 %s1876_s9, 4  ;;  %s1788_s11 = int_to_ptr.vmem [resolvable:$false] %s1787_s11 }
  0x4d   : > { %s1789_s14 = scalar_lea.vmem %s1788_s11, 128  ;;  %p1790_p7 = scmp.lt.s32.totalorder %s230_s15, %s1788_s11 }
  0x4e   : > { %p1785_p5 = pnand %p1783_p0, %p1771_p1  ;;  %p1791_p9 = scmp.lt.s32.totalorder %s1789_s14, %s1782_s10 }
  0x50   : > { %p1786_p3 = pneg %p1785_p5  ;;  %p1792_p10 = por %p1791_p9, %p1790_p7 }
  0x52   : > { %p1793_p8 = pnand %p1792_p10, %p1786_p3 }
  0x54   : > { %1796 = shalt.err (!%p1793_p8)
}
  0x55   : > { %1640 = dma.hbm_to_vmem [thread:$0]  (!%p2014_p11), %s2012_s13, 64, %s230_s15, %s218_s17  }
  0x56   : > { %p2182_p13 = scmp.ne.s32.totalorder %s2177_s26, 0 }
  0x57   : > { %s2035_s23 = sand.u32 (!%p2182_p13), 1, %s1861_s19   ;;  %p2183_p8 = scmp.ne.s32.totalorder (!%p2182_p13), %s2175_s24, 0 }
  0x58   : > { %238 = sbr.rel (%p2182_p13) target bundleno = 720 (0x2d0), region = 40  ;;  %s1599_s27 = sshll.u32 (!%p2182_p13), %s2035_s23, 2 }
  0x59   : > { %s241_s30 = scalar_lea.sflag (!%p2182_p13), [#allocation3], %s2035_s23  ;;  %s2041_s29 = scalar_lea.vmem (!%p2182_p13), [#allocation2], %s1599_s27 }
  0x5d   : > { %1840 = dma.done.wait (%p2183_p8), %s241_s30, 64  }
  0x5e   : > { %1842 = vsyncadd (%p2183_p8), %s241_s30, 4294967232  ;;  %p2184_p10 = scmp.eq.s32.totalorder %s1930_s22, 0 }
  0x60   : > { %1844 = dma.done.wait (%p2184_p10), [#allocation6], 32832   ;;  %p2185_p11 = pmov %p2184_p10 }
  0x61   : > { %p2186_p1 = pmov %p2184_p10 }
  0x62   : > { %1846 = vsyncadd (%p2185_p11), [#allocation6], 4294934464 }
  0x63   : > { %1848 = dma.done.wait (%p2186_p1), [#allocation9], 32768   ;;  %p2187_p2 = pmov %p2186_p1 }
  0x64   : > { %v345_v0 = vld [vmem:[#allocation5 + $0x1e8] sm:$0xff]  ;;  %v344_v2 = vld [vmem:[#allocation5 + $0x1e0] sm:$0xff]  ;;  %s1610_s13 = sshll.u32 %s1930_s22, 6  ;;  %s282_s15 = scalar_lea.vmem [#allocation10], %s1599_s27 }
  0x65   : > { %1850 = vsyncadd (%p2187_p2), [#allocation9], 4294934528  ;;  %v473_v1 = vld [vmem:[#allocation5 + $0x5e8] sm:$0xff]  ;;  %583 = vmatprep.subr.mxu0 %v345_v0  ;;  %v472_v3 = vld [vmem:[#allocation5 + $0x5e0] sm:$0xff]  ;;  %s1490_s16 = sshll.u32 %s282_s15, 4  ;;  %s1488_s8 = scalar_lea.hbm %s2170_s5, %s1610_s13  ;;  %s1491_s16 = int_to_ptr.vmem [resolvable:$true] %s1490_s16 }
  0x66   : > { %654 = vmatprep.subr.mxu1 %v473_v1  ;;  %v341_v4 = vld [vmem:[#allocation5 + $0x1c8] sm:$0xff]  ;;  %584 = vmatpush1.msra.mxu0 %v344_v2  ;;  %v340_v6 = vld [vmem:[#allocation5 + $0x1c0] sm:$0xff]  ;;  %s1476_s10 = scalar_lea.sflag [#allocation4], %s2035_s23  ;;  %s1797_s9 = scalar_lea.vmem %s1491_s16, 64 }
  0x67   : > { %v469_v5 = vld [vmem:[#allocation5 + $0x5c8] sm:$0xff]  ;;  %655 = vmatpush1.msra.mxu1 %v472_v3  ;;  %v468_v7 = vld [vmem:[#allocation5 + $0x5c0] sm:$0xff]  ;;  %585 = vmatprep.subr.mxu0 %v341_v4  ;;  %p1798_p4 = scmp.ne.s32.totalorder %s1491_s16, %s1797_s9  ;;  %p2188_p6 = scmp.ne.s32.totalorder %s2180_s7, 0 }
  0x68   : > { %v337_v8 = vld [vmem:[#allocation5 + $0x1a8] sm:$0xff]  ;;  %656 = vmatprep.subr.mxu1 %v469_v5  ;;  %v336_v10 = vld [vmem:[#allocation5 + $0x1a0] sm:$0xff]  ;;  %586 = vmatpush1.msra.mxu0 %v340_v6  ;;  %s1878_s22 = smov [#allocation10]  }
  0x69   : > { %v465_v9 = vld [vmem:[#allocation5 + $0x5a8] sm:$0xff]  ;;  %v464_v11 = vld [vmem:[#allocation5 + $0x5a0] sm:$0xff]  ;;  %657 = vmatpush1.msra.mxu1 %v468_v7  ;;  %587 = vmatprep.subr.mxu0 %v337_v8  ;;  %p1799_p12 = pnand %p1798_p4, %p2188_p6  ;;  %s1801_s11 = sshll.u32 %s1878_s22, 4  ;;  %s1802_s11 = int_to_ptr.vmem [resolvable:$false] %s1801_s11 }
  0x6a   : > { %v333_v12 = vld [vmem:[#allocation5 + $0x188] sm:$0xff]  ;;  %658 = vmatprep.subr.mxu1 %v465_v9  ;;  %v332_v14 = vld [vmem:[#allocation5 + $0x180] sm:$0xff]  ;;  %588 = vmatpush1.msra.mxu0 %v336_v10  ;;  %s1803_s14 = scalar_lea.vmem %s1802_s11, 128  ;;  %p1804_p5 = scmp.lt.s32.totalorder %s1491_s16, %s1802_s11 }
  0x6b   : > { %v461_v13 = vld [vmem:[#allocation5 + $0x588] sm:$0xff]  ;;  %v460_v15 = vld [vmem:[#allocation5 + $0x580] sm:$0xff]  ;;  %659 = vmatpush1.msra.mxu1 %v464_v11  ;;  %589 = vmatprep.subr.mxu0 %v333_v12  ;;  %p1800_p0 = pneg %p1799_p12  ;;  %p1805_p3 = scmp.lt.s32.totalorder %s1803_s14, %s1797_s9 }
  0x6c   : > { %v329_v16 = vld [vmem:[#allocation5 + $0x168] sm:$0xff]  ;;  %660 = vmatprep.subr.mxu1 %v461_v13  ;;  %v328_v18 = vld [vmem:[#allocation5 + $0x160] sm:$0xff]  ;;  %590 = vmatpush1.msra.mxu0 %v332_v14 }
  0x6d   : > { %v457_v17 = vld [vmem:[#allocation5 + $0x568] sm:$0xff]  ;;  %v456_v19 = vld [vmem:[#allocation5 + $0x560] sm:$0xff]  ;;  %661 = vmatpush1.msra.mxu1 %v460_v15  ;;  %591 = vmatprep.subr.mxu0 %v329_v16  ;;  %p1806_p7 = por %p1805_p3, %p1804_p5 }
  0x6e   : > { %v325_v20 = vld [vmem:[#allocation5 + $0x148] sm:$0xff]  ;;  %662 = vmatprep.subr.mxu1 %v457_v17  ;;  %v324_v22 = vld [vmem:[#allocation5 + $0x140] sm:$0xff]  ;;  %592 = vmatpush1.msra.mxu0 %v328_v18 }
  0x6f   : > { %v453_v21 = vld [vmem:[#allocation5 + $0x548] sm:$0xff]  ;;  %v452_v23 = vld [vmem:[#allocation5 + $0x540] sm:$0xff]  ;;  %663 = vmatpush1.msra.mxu1 %v456_v19  ;;  %593 = vmatprep.subr.mxu0 %v325_v20  ;;  %p1807_p9 = pnand %p1806_p7, %p1800_p0 }
  0x70   : > { %v321_v24 = vld [vmem:[#allocation5 + $0x128] sm:$0xff]  ;;  %664 = vmatprep.subr.mxu1 %v453_v21  ;;  %v320_v26 = vld [vmem:[#allocation5 + $0x120] sm:$0xff]  ;;  %594 = vmatpush1.msra.mxu0 %v324_v22 }
  0x71   : > { %v449_v25 = vld [vmem:[#allocation5 + $0x528] sm:$0xff]  ;;  %v448_v27 = vld [vmem:[#allocation5 + $0x520] sm:$0xff]  ;;  %665 = vmatpush1.msra.mxu1 %v452_v23  ;;  %595 = vmatprep.subr.mxu0 %v321_v24 }
  0x72   : > { %v317_v28 = vld [vmem:[#allocation5 + $0x108] sm:$0xff]  ;;  %666 = vmatprep.subr.mxu1 %v449_v25  ;;  %v316_v30 = vld [vmem:[#allocation5 + $0x100] sm:$0xff]  ;;  %596 = vmatpush1.msra.mxu0 %v320_v26 }
  0x73   : > { %v445_v29 = vld [vmem:[#allocation5 + $0x508] sm:$0xff]  ;;  %v444_v31 = vld [vmem:[#allocation5 + $0x500] sm:$0xff]  ;;  %667 = vmatpush1.msra.mxu1 %v448_v27  ;;  %597 = vmatprep.subr.mxu0 %v317_v28 }
  0x74   : > { %v313_v32 = vld [vmem:[#allocation5 + $0xe8] sm:$0xff]  ;;  %668 = vmatprep.subr.mxu1 %v445_v29  ;;  %v312_v34 = vld [vmem:[#allocation5 + $0xe0] sm:$0xff]  ;;  %598 = vmatpush1.msra.mxu0 %v316_v30 }
  0x75   : > { %v441_v33 = vld [vmem:[#allocation5 + $0x4e8] sm:$0xff]  ;;  %v440_v35 = vld [vmem:[#allocation5 + $0x4e0] sm:$0xff]  ;;  %669 = vmatpush1.msra.mxu1 %v444_v31  ;;  %599 = vmatprep.subr.mxu0 %v313_v32 }
  0x76   : > { %v309_v36 = vld [vmem:[#allocation5 + $0xc8] sm:$0xff]  ;;  %670 = vmatprep.subr.mxu1 %v441_v33  ;;  %v308_v38 = vld [vmem:[#allocation5 + $0xc0] sm:$0xff]  ;;  %600 = vmatpush1.msra.mxu0 %v312_v34 }
  0x77   : > { %v437_v37 = vld [vmem:[#allocation5 + $0x4c8] sm:$0xff]  ;;  %v436_v39 = vld [vmem:[#allocation5 + $0x4c0] sm:$0xff]  ;;  %671 = vmatpush1.msra.mxu1 %v440_v35  ;;  %601 = vmatprep.subr.mxu0 %v309_v36 }
  0x78   : > { %v305_v40 = vld [vmem:[#allocation5 + $0xa8] sm:$0xff]  ;;  %672 = vmatprep.subr.mxu1 %v437_v37  ;;  %v304_v42 = vld [vmem:[#allocation5 + $0xa0] sm:$0xff]  ;;  %602 = vmatpush1.msra.mxu0 %v308_v38  ;;  %v542_v38 = vlaneseq }
  0x79   : > { %v433_v41 = vld [vmem:[#allocation5 + $0x4a8] sm:$0xff]  ;;  %v432_v43 = vld [vmem:[#allocation5 + $0x4a0] sm:$0xff]  ;;  %673 = vmatpush1.msra.mxu1 %v436_v39  ;;  %603 = vmatprep.subr.mxu0 %v305_v40 }
  0x7a   : > { %v301_v44 = vld [vmem:[#allocation5 + $0x88] sm:$0xff]  ;;  %674 = vmatprep.subr.mxu1 %v433_v41  ;;  %v300_v46 = vld [vmem:[#allocation5 + $0x80] sm:$0xff]  ;;  %604 = vmatpush1.msra.mxu0 %v304_v42  ;;  %vm1472_vm0 = vcmp.lt.s32.totalorder %v542_v38, 512 }
  0x7b   : > { %v429_v45 = vld [vmem:[#allocation5 + $0x488] sm:$0xff]  ;;  %v428_v47 = vld [vmem:[#allocation5 + $0x480] sm:$0xff]  ;;  %675 = vmatpush1.msra.mxu1 %v432_v43  ;;  %605 = vmatprep.subr.mxu0 %v301_v44 }
  0x7c   : > { %v297_v48 = vld [vmem:[#allocation5 + $0x68] sm:$0xff]  ;;  %676 = vmatprep.subr.mxu1 %v429_v45  ;;  %v296_v50 = vld [vmem:[#allocation5 + $0x60] sm:$0xff]  ;;  %606 = vmatpush1.msra.mxu0 %v300_v46 }
  0x7d   : > { %v425_v49 = vld [vmem:[#allocation5 + $0x468] sm:$0xff]  ;;  %v424_v51 = vld [vmem:[#allocation5 + $0x460] sm:$0xff]  ;;  %677 = vmatpush1.msra.mxu1 %v428_v47  ;;  %607 = vmatprep.subr.mxu0 %v297_v48  ;;  %v2056_v47 = vshrl.u32 %v542_v38, 7 }
  0x7e   : > { %v293_v52 = vld [vmem:[#allocation5 + $0x48] sm:$0xff]  ;;  %678 = vmatprep.subr.mxu1 %v425_v49  ;;  %v292_v54 = vld [vmem:[#allocation5 + $0x40] sm:$0xff]  ;;  %608 = vmatpush1.msra.mxu0 %v296_v50 }
  0x7f   : > { %v421_v53 = vld [vmem:[#allocation5 + $0x448] sm:$0xff]  ;;  %v420_v55 = vld [vmem:[#allocation5 + $0x440] sm:$0xff]  ;;  %679 = vmatpush1.msra.mxu1 %v424_v51  ;;  %609 = vmatprep.subr.mxu0 %v293_v52 }
  0x80   : > { %v289_v56 = vld [vmem:[#allocation5 + $0x28] sm:$0xff]  ;;  %680 = vmatprep.subr.mxu1 %v421_v53  ;;  %v288_v58 = vld [vmem:[#allocation5 + $0x20] sm:$0xff]  ;;  %610 = vmatpush1.msra.mxu0 %v292_v54 }
  0x81   : > { %v417_v57 = vld [vmem:[#allocation5 + $0x428] sm:$0xff]  ;;  %v416_v59 = vld [vmem:[#allocation5 + $0x420] sm:$0xff]  ;;  %681 = vmatpush1.msra.mxu1 %v420_v55  ;;  %611 = vmatprep.subr.mxu0 %v289_v56  ;;  %v2059_v56 = vsub.s32 1, %v2056_v47 }
  0x82   : > { %v285_v60 = vld [vmem:[#allocation5 + $0x8] sm:$0xff]  ;;  %682 = vmatprep.subr.mxu1 %v417_v57  ;;  %v284_v62 = vld [vmem:[#allocation5] sm:$0xff]  ;;  %612 = vmatpush1.msra.mxu0 %v288_v58 }
  0x83   : > { %v413_v61 = vld [vmem:[#allocation5 + $0x408] sm:$0xff]  ;;  %v412_v63 = vld [vmem:[#allocation5 + $0x400] sm:$0xff]  ;;  %683 = vmatpush1.msra.mxu1 %v416_v59  ;;  %613 = vmatprep.subr.mxu0 %v285_v60  ;;  %v283_v59 = vld [vmem:[%s2041_s29] sm:$0xf]  ;;  %v2063_v60 = vsub.s32 0, %v2056_v47 }
  0x84   : > { %v409_v0 = vld [vmem:[#allocation5 + $0x3e8] sm:$0xff]  ;;  %684 = vmatprep.subr.mxu1 %v413_v61  ;;  %v408_v2 = vld [vmem:[#allocation5 + $0x3e0] sm:$0xff]  ;;  %614 = vmatpush1.msra.mxu0 %v284_v62 }
  0x85   : > { %v537_v1 = vld [vmem:[#allocation5 + $0x7e8] sm:$0xff]  ;;  %v536_v3 = vld [vmem:[#allocation5 + $0x7e0] sm:$0xff]  ;;  %685 = vmatpush1.msra.mxu1 %v412_v63  ;;  %615 = vmatprep.subr.mxu0 %v409_v0  ;;  %v2066_v63 = vsub.s32 3, %v2056_v47 }
  0x86   : > { %v405_v4 = vld [vmem:[#allocation5 + $0x3c8] sm:$0xff]  ;;  %686 = vmatprep.subr.mxu1 %v537_v1  ;;  %v404_v6 = vld [vmem:[#allocation5 + $0x3c0] sm:$0xff]  ;;  %616 = vmatpush2.msra.mxu0 %v408_v2  ;;  %v2069_v2 = vsub.s32 2, %v2056_v47 }
  0x87   : > { %v533_v5 = vld [vmem:[#allocation5 + $0x7c8] sm:$0xff]  ;;  %v532_v7 = vld [vmem:[#allocation5 + $0x7c0] sm:$0xff]  ;;  %687 = vmatpush2.msra.mxu1 %v536_v3  ;;  %617 = vmatprep.subr.mxu0 %v405_v4 }
  0x88   : > { %v401_v8 = vld [vmem:[#allocation5 + $0x3a8] sm:$0xff]  ;;  %688 = vmatprep.subr.mxu1 %v533_v5  ;;  %v400_v10 = vld [vmem:[#allocation5 + $0x3a0] sm:$0xff]  ;;  %618 = vmatpush2.msra.mxu0 %v404_v6  ;;  %v2072_v5 = vrot.slane %v283_v59, %v2059_v56 }
  0x89   : > { %v529_v9 = vld [vmem:[#allocation5 + $0x7a8] sm:$0xff]  ;;  %v528_v11 = vld [vmem:[#allocation5 + $0x7a0] sm:$0xff]  ;;  %689 = vmatpush2.msra.mxu1 %v532_v7  ;;  %619 = vmatprep.subr.mxu0 %v401_v8  ;;  %v2075_v7 = vrot.slane %v283_v59, %v2063_v60 }
  0x8a   : > { %v397_v12 = vld [vmem:[#allocation5 + $0x388] sm:$0xff]  ;;  %690 = vmatprep.subr.mxu1 %v529_v9  ;;  %v396_v14 = vld [vmem:[#allocation5 + $0x380] sm:$0xff]  ;;  %620 = vmatpush2.msra.mxu0 %v400_v10  ;;  %v2078_v9 = vrot.slane %v283_v59, %v2066_v63  ;;  %v347_v10 = vld [vmem:[#allocation5 + $0x1f8] sm:$0xff] }
  0x8b   : > { %v525_v13 = vld [vmem:[#allocation5 + $0x788] sm:$0xff]  ;;  %v524_v15 = vld [vmem:[#allocation5 + $0x780] sm:$0xff]  ;;  %691 = vmatpush2.msra.mxu1 %v528_v11  ;;  %621 = vmatprep.subr.mxu0 %v397_v12  ;;  %v2081_v11 = vrot.slane %v283_v59, %v2069_v2  ;;  %v475_v12 = vld [vmem:[#allocation5 + $0x5f8] sm:$0xff] }
  0x8c   : > { %v393_v16 = vld [vmem:[#allocation5 + $0x368] sm:$0xff]  ;;  %692 = vmatprep.subr.mxu1 %v525_v13  ;;  %v392_v18 = vld [vmem:[#allocation5 + $0x360] sm:$0xff]  ;;  %622 = vmatpush2.msra.mxu0 %v396_v14  ;;  %v346_v13 = vld [vmem:[#allocation5 + $0x1f0] sm:$0xff] }
  0x8d   : > { %v521_v17 = vld [vmem:[#allocation5 + $0x768] sm:$0xff]  ;;  %v520_v19 = vld [vmem:[#allocation5 + $0x760] sm:$0xff]  ;;  %693 = vmatpush2.msra.mxu1 %v524_v15  ;;  %623 = vmatprep.subr.mxu0 %v393_v16  ;;  %v474_v14 = vld [vmem:[#allocation5 + $0x5f0] sm:$0xff] }
  0x8e   : > { %v389_v20 = vld [vmem:[#allocation5 + $0x348] sm:$0xff]  ;;  %694 = vmatprep.subr.mxu1 %v521_v17  ;;  %v388_v22 = vld [vmem:[#allocation5 + $0x340] sm:$0xff]  ;;  %624 = vmatpush2.msra.mxu0 %v392_v18  ;;  %v343_v15 = vld [vmem:[#allocation5 + $0x1d8] sm:$0xff] }
  0x8f   : > { %v517_v21 = vld [vmem:[#allocation5 + $0x748] sm:$0xff]  ;;  %v516_v23 = vld [vmem:[#allocation5 + $0x740] sm:$0xff]  ;;  %695 = vmatpush2.msra.mxu1 %v520_v19  ;;  %625 = vmatprep.subr.mxu0 %v389_v20  ;;  %v471_v16 = vld [vmem:[#allocation5 + $0x5d8] sm:$0xff] }
  0x90   : > { %v385_v24 = vld [vmem:[#allocation5 + $0x328] sm:$0xff]  ;;  %696 = vmatprep.subr.mxu1 %v517_v21  ;;  %v384_v26 = vld [vmem:[#allocation5 + $0x320] sm:$0xff]  ;;  %626 = vmatpush2.msra.mxu0 %v388_v22  ;;  %v342_v17 = vld [vmem:[#allocation5 + $0x1d0] sm:$0xff] }
  0x91   : > { %v513_v25 = vld [vmem:[#allocation5 + $0x728] sm:$0xff]  ;;  %v512_v27 = vld [vmem:[#allocation5 + $0x720] sm:$0xff]  ;;  %697 = vmatpush2.msra.mxu1 %v516_v23  ;;  %627 = vmatprep.subr.mxu0 %v385_v24  ;;  %v470_v18 = vld [vmem:[#allocation5 + $0x5d0] sm:$0xff] }
  0x92   : > { %v381_v28 = vld [vmem:[#allocation5 + $0x308] sm:$0xff]  ;;  %698 = vmatprep.subr.mxu1 %v513_v25  ;;  %v380_v30 = vld [vmem:[#allocation5 + $0x300] sm:$0xff]  ;;  %628 = vmatpush2.msra.mxu0 %v384_v26  ;;  %v339_v19 = vld [vmem:[#allocation5 + $0x1b8] sm:$0xff] }
  0x93   : > { %v509_v29 = vld [vmem:[#allocation5 + $0x708] sm:$0xff]  ;;  %v508_v31 = vld [vmem:[#allocation5 + $0x700] sm:$0xff]  ;;  %699 = vmatpush2.msra.mxu1 %v512_v27  ;;  %629 = vmatprep.subr.mxu0 %v381_v28  ;;  %v467_v20 = vld [vmem:[#allocation5 + $0x5b8] sm:$0xff] }
  0x94   : > { %v377_v32 = vld [vmem:[#allocation5 + $0x2e8] sm:$0xff]  ;;  %700 = vmatprep.subr.mxu1 %v509_v29  ;;  %v376_v34 = vld [vmem:[#allocation5 + $0x2e0] sm:$0xff]  ;;  %630 = vmatpush2.msra.mxu0 %v380_v30  ;;  %v338_v21 = vld [vmem:[#allocation5 + $0x1b0] sm:$0xff] }
  0x95   : > { %v505_v33 = vld [vmem:[#allocation5 + $0x6e8] sm:$0xff]  ;;  %v504_v35 = vld [vmem:[#allocation5 + $0x6e0] sm:$0xff]  ;;  %701 = vmatpush2.msra.mxu1 %v508_v31  ;;  %631 = vmatprep.subr.mxu0 %v377_v32  ;;  %v466_v22 = vld [vmem:[#allocation5 + $0x5b0] sm:$0xff] }
  0x96   : > { %v373_v36 = vld [vmem:[#allocation5 + $0x2c8] sm:$0xff]  ;;  %702 = vmatprep.subr.mxu1 %v505_v33  ;;  %v372_v39 = vld [vmem:[#allocation5 + $0x2c0] sm:$0xff]  ;;  %632 = vmatpush2.msra.mxu0 %v376_v34  ;;  %v335_v23 = vld [vmem:[#allocation5 + $0x198] sm:$0xff] }
  0x97   : > { %v501_v37 = vld [vmem:[#allocation5 + $0x6c8] sm:$0xff]  ;;  %v500_v40 = vld [vmem:[#allocation5 + $0x6c0] sm:$0xff]  ;;  %703 = vmatpush2.msra.mxu1 %v504_v35  ;;  %633 = vmatprep.subr.mxu0 %v373_v36  ;;  %v463_v24 = vld [vmem:[#allocation5 + $0x598] sm:$0xff] }
  0x98   : > { %v369_v41 = vld [vmem:[#allocation5 + $0x2a8] sm:$0xff]  ;;  %704 = vmatprep.subr.mxu1 %v501_v37  ;;  %v368_v43 = vld [vmem:[#allocation5 + $0x2a0] sm:$0xff]  ;;  %634 = vmatpush2.msra.mxu0 %v372_v39  ;;  %v334_v25 = vld [vmem:[#allocation5 + $0x190] sm:$0xff] }
  0x99   : > { %v497_v42 = vld [vmem:[#allocation5 + $0x6a8] sm:$0xff]  ;;  %v496_v44 = vld [vmem:[#allocation5 + $0x6a0] sm:$0xff]  ;;  %705 = vmatpush2.msra.mxu1 %v500_v40  ;;  %635 = vmatprep.subr.mxu0 %v369_v41  ;;  %v462_v26 = vld [vmem:[#allocation5 + $0x590] sm:$0xff] }
  0x9a   : > { %v365_v45 = vld [vmem:[#allocation5 + $0x288] sm:$0xff]  ;;  %706 = vmatprep.subr.mxu1 %v497_v42  ;;  %v364_v48 = vld [vmem:[#allocation5 + $0x280] sm:$0xff]  ;;  %636 = vmatpush2.msra.mxu0 %v368_v43  ;;  %v331_v27 = vld [vmem:[#allocation5 + $0x178] sm:$0xff] }
  0x9b   : > { %v493_v46 = vld [vmem:[#allocation5 + $0x688] sm:$0xff]  ;;  %v492_v49 = vld [vmem:[#allocation5 + $0x680] sm:$0xff]  ;;  %707 = vmatpush2.msra.mxu1 %v496_v44  ;;  %637 = vmatprep.subr.mxu0 %v365_v45  ;;  %v459_v28 = vld [vmem:[#allocation5 + $0x578] sm:$0xff] }
  0x9c   : > { %v361_v50 = vld [vmem:[#allocation5 + $0x268] sm:$0xff]  ;;  %708 = vmatprep.subr.mxu1 %v493_v46  ;;  %v360_v52 = vld [vmem:[#allocation5 + $0x260] sm:$0xff]  ;;  %638 = vmatpush2.msra.mxu0 %v364_v48  ;;  %v330_v29 = vld [vmem:[#allocation5 + $0x170] sm:$0xff] }
  0x9d   : > { %v489_v51 = vld [vmem:[#allocation5 + $0x668] sm:$0xff]  ;;  %v488_v53 = vld [vmem:[#allocation5 + $0x660] sm:$0xff]  ;;  %709 = vmatpush2.msra.mxu1 %v492_v49  ;;  %639 = vmatprep.subr.mxu0 %v361_v50  ;;  %v458_v30 = vld [vmem:[#allocation5 + $0x570] sm:$0xff] }
  0x9e   : > { %v357_v54 = vld [vmem:[#allocation5 + $0x248] sm:$0xff]  ;;  %710 = vmatprep.subr.mxu1 %v489_v51  ;;  %v356_v57 = vld [vmem:[#allocation5 + $0x240] sm:$0xff]  ;;  %640 = vmatpush2.msra.mxu0 %v360_v52  ;;  %v327_v31 = vld [vmem:[#allocation5 + $0x158] sm:$0xff] }
  0x9f   : > { %v485_v55 = vld [vmem:[#allocation5 + $0x648] sm:$0xff]  ;;  %v484_v58 = vld [vmem:[#allocation5 + $0x640] sm:$0xff]  ;;  %711 = vmatpush2.msra.mxu1 %v488_v53  ;;  %641 = vmatprep.subr.mxu0 %v357_v54  ;;  %v455_v32 = vld [vmem:[#allocation5 + $0x558] sm:$0xff] }
  0xa0   : > { %v353_v61 = vld [vmem:[#allocation5 + $0x228] sm:$0xff]  ;;  %712 = vmatprep.subr.mxu1 %v485_v55  ;;  %v352_v0 = vld [vmem:[#allocation5 + $0x220] sm:$0xff]  ;;  %642 = vmatpush2.msra.mxu0 %v356_v57  ;;  %v326_v33 = vld [vmem:[#allocation5 + $0x150] sm:$0xff] }
  0xa1   : > { %v481_v62 = vld [vmem:[#allocation5 + $0x628] sm:$0xff]  ;;  %v480_v1 = vld [vmem:[#allocation5 + $0x620] sm:$0xff]  ;;  %713 = vmatpush2.msra.mxu1 %v484_v58  ;;  %643 = vmatprep.subr.mxu0 %v353_v61  ;;  %v454_v34 = vld [vmem:[#allocation5 + $0x550] sm:$0xff] }
  0xa2   : > { %v349_v3 = vld [vmem:[#allocation5 + $0x208] sm:$0xff]  ;;  %714 = vmatprep.subr.mxu1 %v481_v62  ;;  %v348_v6 = vld [vmem:[#allocation5 + $0x200] sm:$0xff]  ;;  %644 = vmatpush2.msra.mxu0 %v352_v0  ;;  %v323_v35 = vld [vmem:[#allocation5 + $0x138] sm:$0xff] }
  0xa3   : > { %v477_v4 = vld [vmem:[#allocation5 + $0x608] sm:$0xff]  ;;  %715 = vmatpush2.msra.mxu1 %v480_v1  ;;  %v476_v8 = vld [vmem:[#allocation5 + $0x600] sm:$0xff]  ;;  %645 = vmatprep.subr.mxu0 %v349_v3  ;;  %v451_v36 = vld [vmem:[#allocation5 + $0x538] sm:$0xff] }
  0xa4   : > { %716 = vmatprep.subr.mxu1 %v477_v4  ;;  %646 = vmatpush2.msra.mxu0 %v348_v6  ;;  %v322_v37 = vld [vmem:[#allocation5 + $0x130] sm:$0xff]  ;;  %v319_v40 = vld [vmem:[#allocation5 + $0x118] sm:$0xff] }
  0xa5   : > { %647 = vmatprep.mubr.f32.mxu0 %v2072_v5  ;;  %717 = vmatpush2.msra.mxu1 %v476_v8  ;;  %v450_v39 = vld [vmem:[#allocation5 + $0x530] sm:$0xff]  ;;  %v447_v41 = vld [vmem:[#allocation5 + $0x518] sm:$0xff] }
  0xa6   : > { %648 = vmatmul.mubr.f32.vlgmr.msra.gmra.mxu0 %v2075_v7  ;;  %718 = vmatprep.mubr.f32.mxu1 %v2078_v9  ;;  %v318_v42 = vld [vmem:[#allocation5 + $0x110] sm:$0xff]  ;;  %v315_v44 = vld [vmem:[#allocation5 + $0xf8] sm:$0xff] }
  0xa7   : > { %725 = vmatprep.subr.mxu0 %v347_v10  ;;  %796 = vmatprep.subr.mxu1 %v475_v12  ;;  %v446_v43 = vld [vmem:[#allocation5 + $0x510] sm:$0xff]  ;;  %v443_v45 = vld [vmem:[#allocation5 + $0x4f8] sm:$0xff] }
  0xa8   : > { %719 = vmatmul.mubr.f32.vlgmr.msra.gmra.mxu1 %v2081_v11  ;;  %726 = vmatpush1.msra.mxu0 %v346_v13  ;;  %v314_v46 = vld [vmem:[#allocation5 + $0xf0] sm:$0xff]  ;;  %v311_v49 = vld [vmem:[#allocation5 + $0xd8] sm:$0xff] }
  0xa9   : > { %797 = vmatpush1.msra.mxu1 %v474_v14  ;;  %727 = vmatprep.subr.mxu0 %v343_v15  ;;  %v442_v48 = vld [vmem:[#allocation5 + $0x4f0] sm:$0xff]  ;;  %v439_v50 = vld [vmem:[#allocation5 + $0x4d8] sm:$0xff] }
  0xaa   : > { %798 = vmatprep.subr.mxu1 %v471_v16  ;;  %728 = vmatpush1.msra.mxu0 %v342_v17  ;;  %v310_v51 = vld [vmem:[#allocation5 + $0xd0] sm:$0xff]  ;;  %v307_v53 = vld [vmem:[#allocation5 + $0xb8] sm:$0xff] }
  0xab   : > { %799 = vmatpush1.msra.mxu1 %v470_v18  ;;  %729 = vmatprep.subr.mxu0 %v339_v19  ;;  %v438_v52 = vld [vmem:[#allocation5 + $0x4d0] sm:$0xff]  ;;  %v435_v54 = vld [vmem:[#allocation5 + $0x4b8] sm:$0xff] }
  0xac   : > { %800 = vmatprep.subr.mxu1 %v467_v20  ;;  %730 = vmatpush1.msra.mxu0 %v338_v21  ;;  %v306_v55 = vld [vmem:[#allocation5 + $0xb0] sm:$0xff]  ;;  %v303_v58 = vld [vmem:[#allocation5 + $0x98] sm:$0xff] }
  0xad   : > { %801 = vmatpush1.msra.mxu1 %v466_v22  ;;  %731 = vmatprep.subr.mxu0 %v335_v23  ;;  %v434_v57 = vld [vmem:[#allocation5 + $0x4b0] sm:$0xff]  ;;  %v431_v59 = vld [vmem:[#allocation5 + $0x498] sm:$0xff] }
  0xae   : > { %802 = vmatprep.subr.mxu1 %v463_v24  ;;  %732 = vmatpush1.msra.mxu0 %v334_v25  ;;  %v302_v61 = vld [vmem:[#allocation5 + $0x90] sm:$0xff]  ;;  %v299_v0 = vld [vmem:[#allocation5 + $0x78] sm:$0xff] }
  0xaf   : > { %803 = vmatpush1.msra.mxu1 %v462_v26  ;;  %733 = vmatprep.subr.mxu0 %v331_v27  ;;  %v430_v62 = vld [vmem:[#allocation5 + $0x490] sm:$0xff]  ;;  %v427_v1 = vld [vmem:[#allocation5 + $0x478] sm:$0xff] }
  0xb0   : > { %804 = vmatprep.subr.mxu1 %v459_v28  ;;  %734 = vmatpush1.msra.mxu0 %v330_v29  ;;  %v298_v3 = vld [vmem:[#allocation5 + $0x70] sm:$0xff]  ;;  %v295_v6 = vld [vmem:[#allocation5 + $0x58] sm:$0xff] }
  0xb1   : > { %805 = vmatpush1.msra.mxu1 %v458_v30  ;;  %735 = vmatprep.subr.mxu0 %v327_v31  ;;  %v426_v4 = vld [vmem:[#allocation5 + $0x470] sm:$0xff]  ;;  %v423_v8 = vld [vmem:[#allocation5 + $0x458] sm:$0xff] }
  0xb2   : > { %806 = vmatprep.subr.mxu1 %v455_v32  ;;  %736 = vmatpush1.msra.mxu0 %v326_v33  ;;  %v294_v10 = vld [vmem:[#allocation5 + $0x50] sm:$0xff]  ;;  %v291_v13 = vld [vmem:[#allocation5 + $0x38] sm:$0xff] }
  0xb3   : > { %807 = vmatpush1.msra.mxu1 %v454_v34  ;;  %737 = vmatprep.subr.mxu0 %v323_v35  ;;  %v422_v12 = vld [vmem:[#allocation5 + $0x450] sm:$0xff]  ;;  %v419_v14 = vld [vmem:[#allocation5 + $0x438] sm:$0xff] }
  0xb4   : > { %808 = vmatprep.subr.mxu1 %v451_v36  ;;  %738 = vmatpush1.msra.mxu0 %v322_v37  ;;  %v290_v15 = vld [vmem:[#allocation5 + $0x30] sm:$0xff]  ;;  %v287_v17 = vld [vmem:[#allocation5 + $0x18] sm:$0xff] }
  0xb5   : > { %809 = vmatpush1.msra.mxu1 %v450_v39  ;;  %739 = vmatprep.subr.mxu0 %v319_v40  ;;  %v418_v16 = vld [vmem:[#allocation5 + $0x430] sm:$0xff]  ;;  %v415_v18 = vld [vmem:[#allocation5 + $0x418] sm:$0xff] }
  0xb6   : > { %810 = vmatprep.subr.mxu1 %v447_v41  ;;  %740 = vmatpush1.msra.mxu0 %v318_v42  ;;  %v286_v19 = vld [vmem:[#allocation5 + $0x10] sm:$0xff]  ;;  %v411_v21 = vld [vmem:[#allocation5 + $0x3f8] sm:$0xff] }
  0xb7   : > { %811 = vmatpush1.msra.mxu1 %v446_v43  ;;  %741 = vmatprep.subr.mxu0 %v315_v44  ;;  %v414_v20 = vld [vmem:[#allocation5 + $0x410] sm:$0xff]  ;;  %v539_v22 = vld [vmem:[#allocation5 + $0x7f8] sm:$0xff] }
  0xb8   : > { %812 = vmatprep.subr.mxu1 %v443_v45  ;;  %742 = vmatpush1.msra.mxu0 %v314_v46  ;;  %v410_v23 = vld [vmem:[#allocation5 + $0x3f0] sm:$0xff]  ;;  %v407_v25 = vld [vmem:[#allocation5 + $0x3d8] sm:$0xff] }
  0xb9   : > { %813 = vmatpush1.msra.mxu1 %v442_v48  ;;  %743 = vmatprep.subr.mxu0 %v311_v49  ;;  %v538_v24 = vld [vmem:[#allocation5 + $0x7f0] sm:$0xff]  ;;  %v535_v26 = vld [vmem:[#allocation5 + $0x7d8] sm:$0xff] }
  0xba   : > { %814 = vmatprep.subr.mxu1 %v439_v50  ;;  %744 = vmatpush1.msra.mxu0 %v310_v51  ;;  %v406_v27 = vld [vmem:[#allocation5 + $0x3d0] sm:$0xff]  ;;  %v403_v29 = vld [vmem:[#allocation5 + $0x3b8] sm:$0xff] }
  0xbb   : > { %815 = vmatpush1.msra.mxu1 %v438_v52  ;;  %745 = vmatprep.subr.mxu0 %v307_v53  ;;  %v534_v28 = vld [vmem:[#allocation5 + $0x7d0] sm:$0xff]  ;;  %v531_v30 = vld [vmem:[#allocation5 + $0x7b8] sm:$0xff] }
  0xbc   : > { %816 = vmatprep.subr.mxu1 %v435_v54  ;;  %746 = vmatpush1.msra.mxu0 %v306_v55  ;;  %v402_v31 = vld [vmem:[#allocation5 + $0x3b0] sm:$0xff]  ;;  %v399_v33 = vld [vmem:[#allocation5 + $0x398] sm:$0xff] }
  0xbd   : > { %817 = vmatpush1.msra.mxu1 %v434_v57  ;;  %747 = vmatprep.subr.mxu0 %v303_v58  ;;  %v530_v32 = vld [vmem:[#allocation5 + $0x7b0] sm:$0xff]  ;;  %v527_v34 = vld [vmem:[#allocation5 + $0x798] sm:$0xff] }
  0xbe   : > { %818 = vmatprep.subr.mxu1 %v431_v59  ;;  %748 = vmatpush1.msra.mxu0 %v302_v61  ;;  %v398_v35 = vld [vmem:[#allocation5 + $0x390] sm:$0xff]  ;;  %v395_v37 = vld [vmem:[#allocation5 + $0x378] sm:$0xff] }
  0xbf   : > { %819 = vmatpush1.msra.mxu1 %v430_v62  ;;  %749 = vmatprep.subr.mxu0 %v299_v0  ;;  %v526_v36 = vld [vmem:[#allocation5 + $0x790] sm:$0xff]  ;;  %v523_v39 = vld [vmem:[#allocation5 + $0x778] sm:$0xff] }
  0xc0   : > { %820 = vmatprep.subr.mxu1 %v427_v1  ;;  %750 = vmatpush1.msra.mxu0 %v298_v3  ;;  %v394_v40 = vld [vmem:[#allocation5 + $0x370] sm:$0xff]  ;;  %v391_v42 = vld [vmem:[#allocation5 + $0x358] sm:$0xff] }
  0xc1   : > { %821 = vmatpush1.msra.mxu1 %v426_v4  ;;  %751 = vmatprep.subr.mxu0 %v295_v6  ;;  %v522_v41 = vld [vmem:[#allocation5 + $0x770] sm:$0xff]  ;;  %v519_v43 = vld [vmem:[#allocation5 + $0x758] sm:$0xff] }
  0xc2   : > { %822 = vmatprep.subr.mxu1 %v423_v8  ;;  %752 = vmatpush1.msra.mxu0 %v294_v10  ;;  %v390_v44 = vld [vmem:[#allocation5 + $0x350] sm:$0xff]  ;;  %v387_v46 = vld [vmem:[#allocation5 + $0x338] sm:$0xff] }
  0xc3   : > { %823 = vmatpush1.msra.mxu1 %v422_v12  ;;  %753 = vmatprep.subr.mxu0 %v291_v13  ;;  %v518_v45 = vld [vmem:[#allocation5 + $0x750] sm:$0xff]  ;;  %v515_v48 = vld [vmem:[#allocation5 + $0x738] sm:$0xff] }
  0xc4   : > { %824 = vmatprep.subr.mxu1 %v419_v14  ;;  %754 = vmatpush1.msra.mxu0 %v290_v15  ;;  %v386_v49 = vld [vmem:[#allocation5 + $0x330] sm:$0xff]  ;;  %v383_v51 = vld [vmem:[#allocation5 + $0x318] sm:$0xff] }
  0xc5   : > { %825 = vmatpush1.msra.mxu1 %v418_v16  ;;  %755 = vmatprep.subr.mxu0 %v287_v17  ;;  %v514_v50 = vld [vmem:[#allocation5 + $0x730] sm:$0xff]  ;;  %v511_v52 = vld [vmem:[#allocation5 + $0x718] sm:$0xff] }
  0xc6   : > { %826 = vmatprep.subr.mxu1 %v415_v18  ;;  %756 = vmatpush1.msra.mxu0 %v286_v19  ;;  %v382_v53 = vld [vmem:[#allocation5 + $0x310] sm:$0xff]  ;;  %v379_v55 = vld [vmem:[#allocation5 + $0x2f8] sm:$0xff] }
  0xc7   : > { %827 = vmatpush1.msra.mxu1 %v414_v20  ;;  %757 = vmatprep.subr.mxu0 %v411_v21  ;;  %v510_v54 = vld [vmem:[#allocation5 + $0x710] sm:$0xff]  ;;  %v507_v57 = vld [vmem:[#allocation5 + $0x6f8] sm:$0xff] }
  0xc8   : > { %828 = vmatprep.subr.mxu1 %v539_v22  ;;  %758 = vmatpush2.msra.mxu0 %v410_v23  ;;  %v378_v58 = vld [vmem:[#allocation5 + $0x2f0] sm:$0xff]  ;;  %v375_v61 = vld [vmem:[#allocation5 + $0x2d8] sm:$0xff] }
  0xc9   : > { %829 = vmatpush2.msra.mxu1 %v538_v24  ;;  %759 = vmatprep.subr.mxu0 %v407_v25  ;;  %v506_v59 = vld [vmem:[#allocation5 + $0x6f0] sm:$0xff]  ;;  %v503_v62 = vld [vmem:[#allocation5 + $0x6d8] sm:$0xff] }
  0xca   : > { %830 = vmatprep.subr.mxu1 %v535_v26  ;;  %760 = vmatpush2.msra.mxu0 %v406_v27  ;;  %v374_v0 = vld [vmem:[#allocation5 + $0x2d0] sm:$0xff]  ;;  %v371_v3 = vld [vmem:[#allocation5 + $0x2b8] sm:$0xff] }
  0xcb   : > { %831 = vmatpush2.msra.mxu1 %v534_v28  ;;  %761 = vmatprep.subr.mxu0 %v403_v29  ;;  %v502_v1 = vld [vmem:[#allocation5 + $0x6d0] sm:$0xff]  ;;  %v499_v4 = vld [vmem:[#allocation5 + $0x6b8] sm:$0xff] }
  0xcc   : > { %832 = vmatprep.subr.mxu1 %v531_v30  ;;  %762 = vmatpush2.msra.mxu0 %v402_v31  ;;  %v370_v6 = vld [vmem:[#allocation5 + $0x2b0] sm:$0xff]  ;;  %v367_v10 = vld [vmem:[#allocation5 + $0x298] sm:$0xff] }
  0xcd   : > { %833 = vmatpush2.msra.mxu1 %v530_v32  ;;  %763 = vmatprep.subr.mxu0 %v399_v33  ;;  %v498_v8 = vld [vmem:[#allocation5 + $0x6b0] sm:$0xff]  ;;  %v495_v12 = vld [vmem:[#allocation5 + $0x698] sm:$0xff]  ;;  %v931_v32 = vld [vmem:[#allocation8 + $0x1e0] sm:$0xff] }
  0xce   : > { %834 = vmatprep.subr.mxu1 %v527_v34  ;;  %764 = vmatpush2.msra.mxu0 %v398_v35  ;;  %v366_v13 = vld [vmem:[#allocation5 + $0x290] sm:$0xff]  ;;  %v363_v15 = vld [vmem:[#allocation5 + $0x278] sm:$0xff]  ;;  %v927_v34 = vld [vmem:[#allocation8 + $0x1c0] sm:$0xff] }
  0xcf   : > { %835 = vmatpush2.msra.mxu1 %v526_v36  ;;  %765 = vmatprep.subr.mxu0 %v395_v37  ;;  %v494_v14 = vld [vmem:[#allocation5 + $0x690] sm:$0xff]  ;;  %v491_v16 = vld [vmem:[#allocation5 + $0x678] sm:$0xff]  ;;  %v923_v36 = vld [vmem:[#allocation8 + $0x1a0] sm:$0xff] }
  0xd0   : > { %836 = vmatprep.subr.mxu1 %v523_v39  ;;  %766 = vmatpush2.msra.mxu0 %v394_v40  ;;  %v362_v17 = vld [vmem:[#allocation5 + $0x270] sm:$0xff]  ;;  %v359_v19 = vld [vmem:[#allocation5 + $0x258] sm:$0xff]  ;;  %v919_v39 = vld [vmem:[#allocation8 + $0x180] sm:$0xff] }
  0xd1   : > { %837 = vmatpush2.msra.mxu1 %v522_v41  ;;  %767 = vmatprep.subr.mxu0 %v391_v42  ;;  %v490_v18 = vld [vmem:[#allocation5 + $0x670] sm:$0xff]  ;;  %v487_v20 = vld [vmem:[#allocation5 + $0x658] sm:$0xff]  ;;  %v915_v42 = vld [vmem:[#allocation8 + $0x160] sm:$0xff] }
  0xd2   : > { %838 = vmatprep.subr.mxu1 %v519_v43  ;;  %768 = vmatpush2.msra.mxu0 %v390_v44  ;;  %v358_v21 = vld [vmem:[#allocation5 + $0x250] sm:$0xff]  ;;  %v355_v23 = vld [vmem:[#allocation5 + $0x238] sm:$0xff]  ;;  %v1059_v43 = vld [vmem:[#allocation8 + $0x5e0] sm:$0xff] }
  0xd3   : > { %839 = vmatpush2.msra.mxu1 %v518_v45  ;;  %769 = vmatprep.subr.mxu0 %v387_v46  ;;  %v486_v22 = vld [vmem:[#allocation5 + $0x650] sm:$0xff]  ;;  %v483_v24 = vld [vmem:[#allocation5 + $0x638] sm:$0xff]  ;;  %v911_v46 = vld [vmem:[#allocation8 + $0x140] sm:$0xff] }
  0xd4   : > { %840 = vmatprep.subr.mxu1 %v515_v48  ;;  %770 = vmatpush2.msra.mxu0 %v386_v49  ;;  %v354_v25 = vld [vmem:[#allocation5 + $0x230] sm:$0xff]  ;;  %v351_v27 = vld [vmem:[#allocation5 + $0x218] sm:$0xff]  ;;  %v1055_v48 = vld [vmem:[#allocation8 + $0x5c0] sm:$0xff] }
  0xd5   : > { %841 = vmatpush2.msra.mxu1 %v514_v50  ;;  %771 = vmatprep.subr.mxu0 %v383_v51  ;;  %v482_v26 = vld [vmem:[#allocation5 + $0x630] sm:$0xff]  ;;  %v479_v28 = vld [vmem:[#allocation5 + $0x618] sm:$0xff]  ;;  %v907_v51 = vld [vmem:[#allocation8 + $0x120] sm:$0xff] }
  0xd6   : > { %842 = vmatprep.subr.mxu1 %v511_v52  ;;  %772 = vmatpush2.msra.mxu0 %v382_v53  ;;  %v350_v29 = vld [vmem:[#allocation5 + $0x210] sm:$0xff]  ;;  %v1051_v52 = vld [vmem:[#allocation8 + $0x5a0] sm:$0xff] }
  0xd7   : > { %843 = vmatpush2.msra.mxu1 %v510_v54  ;;  %773 = vmatprep.subr.mxu0 %v379_v55  ;;  %v478_v30 = vld [vmem:[#allocation5 + $0x610] sm:$0xff]  ;;  %v903_v55 = vld [vmem:[#allocation8 + $0x100] sm:$0xff] }
  0xd8   : > { %844 = vmatprep.subr.mxu1 %v507_v57  ;;  %774 = vmatpush2.msra.mxu0 %v378_v58  ;;  %v932_v31 = vld [vmem:[#allocation8 + $0x1e8] sm:$0xff]  ;;  %v1047_v57 = vld [vmem:[#allocation8 + $0x580] sm:$0xff] }
  0xd9   : > { %845 = vmatpush2.msra.mxu1 %v506_v59  ;;  %775 = vmatprep.subr.mxu0 %v375_v61  ;;  %v928_v33 = vld [vmem:[#allocation8 + $0x1c8] sm:$0xff]  ;;  %v899_v61 = vld [vmem:[#allocation8 + $0xe0] sm:$0xff] }
  0xda   : > { %846 = vmatprep.subr.mxu1 %v503_v62  ;;  %776 = vmatpush2.msra.mxu0 %v374_v0  ;;  %v924_v35 = vld [vmem:[#allocation8 + $0x1a8] sm:$0xff]  ;;  %v1043_v62 = vld [vmem:[#allocation8 + $0x560] sm:$0xff] }
  0xdb   : > { %847 = vmatpush2.msra.mxu1 %v502_v1  ;;  %777 = vmatprep.subr.mxu0 %v371_v3  ;;  %v920_v37 = vld [vmem:[#allocation8 + $0x188] sm:$0xff]  ;;  %v895_v3 = vld [vmem:[#allocation8 + $0xc0] sm:$0xff] }
  0xdc   : > { %848 = vmatprep.subr.mxu1 %v499_v4  ;;  %778 = vmatpush2.msra.mxu0 %v370_v6  ;;  %v916_v40 = vld [vmem:[#allocation8 + $0x168] sm:$0xff]  ;;  %v1039_v4 = vld [vmem:[#allocation8 + $0x540] sm:$0xff] }
  0xdd   : > { %849 = vmatpush2.msra.mxu1 %v498_v8  ;;  %779 = vmatprep.subr.mxu0 %v367_v10  ;;  %v1060_v41 = vld [vmem:[#allocation8 + $0x5e8] sm:$0xff]  ;;  %v891_v10 = vld [vmem:[#allocation8 + $0xa0] sm:$0xff] }
  0xde   : > { %850 = vmatprep.subr.mxu1 %v495_v12  ;;  %780 = vmatpush2.msra.mxu0 %v366_v13  ;;  %v912_v44 = vld [vmem:[#allocation8 + $0x148] sm:$0xff]  ;;  %v1035_v12 = vld [vmem:[#allocation8 + $0x520] sm:$0xff] }
  0xdf   : > { %851 = vmatpush2.msra.mxu1 %v494_v14  ;;  %781 = vmatprep.subr.mxu0 %v363_v15  ;;  %v1056_v45 = vld [vmem:[#allocation8 + $0x5c8] sm:$0xff]  ;;  %v887_v15 = vld [vmem:[#allocation8 + $0x80] sm:$0xff] }
  0xe0   : > { %852 = vmatprep.subr.mxu1 %v491_v16  ;;  %782 = vmatpush2.msra.mxu0 %v362_v17  ;;  %v908_v49 = vld [vmem:[#allocation8 + $0x128] sm:$0xff]  ;;  %v1031_v16 = vld [vmem:[#allocation8 + $0x500] sm:$0xff] }
  0xe1   : > { %853 = vmatpush2.msra.mxu1 %v490_v18  ;;  %783 = vmatprep.subr.mxu0 %v359_v19  ;;  %v1052_v50 = vld [vmem:[#allocation8 + $0x5a8] sm:$0xff]  ;;  %v883_v19 = vld [vmem:[#allocation8 + $0x60] sm:$0xff] }
  0xe2   : > { %854 = vmatprep.subr.mxu1 %v487_v20  ;;  %784 = vmatpush2.msra.mxu0 %v358_v21  ;;  %v904_v53 = vld [vmem:[#allocation8 + $0x108] sm:$0xff]  ;;  %v1027_v20 = vld [vmem:[#allocation8 + $0x4e0] sm:$0xff] }
  0xe3   : > { %855 = vmatpush2.msra.mxu1 %v486_v22  ;;  %785 = vmatprep.subr.mxu0 %v355_v23  ;;  %v1048_v54 = vld [vmem:[#allocation8 + $0x588] sm:$0xff]  ;;  %v879_v23 = vld [vmem:[#allocation8 + $0x40] sm:$0xff] }
  0xe4   : > { %856 = vmatprep.subr.mxu1 %v483_v24  ;;  %786 = vmatpush2.msra.mxu0 %v354_v25  ;;  %v900_v58 = vld [vmem:[#allocation8 + $0xe8] sm:$0xff]  ;;  %v1023_v24 = vld [vmem:[#allocation8 + $0x4c0] sm:$0xff] }
  0xe5   : > { %857 = vmatpush2.msra.mxu1 %v482_v26  ;;  %787 = vmatprep.subr.mxu0 %v351_v27  ;;  %v1044_v59 = vld [vmem:[#allocation8 + $0x568] sm:$0xff]  ;;  %v875_v27 = vld [vmem:[#allocation8 + $0x20] sm:$0xff] }
  0xe6   : > { %858 = vmatprep.subr.mxu1 %v479_v28  ;;  %788 = vmatpush2.msra.mxu0 %v350_v29  ;;  %v896_v0 = vld [vmem:[#allocation8 + $0xc8] sm:$0xff]  ;;  %v1019_v28 = vld [vmem:[#allocation8 + $0x4a0] sm:$0xff] }
  0xe7   : > { %789 = vmatprep.mubr.f32.mxu0 %v2072_v5  ;;  %859 = vmatpush2.msra.mxu1 %v478_v30  ;;  %v1040_v1 = vld [vmem:[#allocation8 + $0x548] sm:$0xff] }
  0xe8   : > { %860 = vmatprep.mubr.f32.mxu1 %v2078_v9  ;;  %790 = vmatmul.mubr.f32.vlgmr.msra.gmra.mxu0 %v2075_v7  ;;  %v892_v6 = vld [vmem:[#allocation8 + $0xa8] sm:$0xff] }
  0xe9   : > { %861 = vmatmul.mubr.f32.vlgmr.msra.gmra.mxu1 %v2081_v11  ;;  %1149 = vmatprep.subr.mxu0 %v932_v31  ;;  %v1036_v8 = vld [vmem:[#allocation8 + $0x528] sm:$0xff]  ;;  %v871_v31 = vld [vmem:[#allocation8] sm:$0xff] }
  0xea   : > { %1150 = vmatpush1.msra.mxu0 %v931_v32  ;;  %1220 = vmatprep.subr.mxu1 %v1060_v41  ;;  %v888_v13 = vld [vmem:[#allocation8 + $0x88] sm:$0xff]  ;;  %v1015_v32 = vld [vmem:[#allocation8 + $0x480] sm:$0xff] }
  0xeb   : > { %1151 = vmatprep.subr.mxu0 %v928_v33  ;;  %1221 = vmatpush1.msra.mxu1 %v1059_v43  ;;  %v1032_v14 = vld [vmem:[#allocation8 + $0x508] sm:$0xff]  ;;  %v1007_v41 = vld [vmem:[#allocation8 + $0x440] sm:$0xff] }
  0xec   : > { %1152 = vmatpush1.msra.mxu0 %v927_v34  ;;  %1222 = vmatprep.subr.mxu1 %v1056_v45  ;;  %v884_v17 = vld [vmem:[#allocation8 + $0x68] sm:$0xff]  ;;  %v1003_v45 = vld [vmem:[#allocation8 + $0x420] sm:$0xff] }
  0xed   : > { %1153 = vmatprep.subr.mxu0 %v924_v35  ;;  %1223 = vmatpush1.msra.mxu1 %v1055_v48  ;;  %v1028_v18 = vld [vmem:[#allocation8 + $0x4e8] sm:$0xff]  ;;  %v995_v35 = vld [vmem:[#allocation8 + $0x3e0] sm:$0xff] }
  0xee   : > { %1154 = vmatpush1.msra.mxu0 %v923_v36  ;;  %1224 = vmatprep.subr.mxu1 %v1052_v50  ;;  %v880_v21 = vld [vmem:[#allocation8 + $0x48] sm:$0xff]  ;;  %v1011_v36 = vld [vmem:[#allocation8 + $0x460] sm:$0xff] }
  0xef   : > { %1155 = vmatprep.subr.mxu0 %v920_v37  ;;  %1225 = vmatpush1.msra.mxu1 %v1051_v52  ;;  %v1024_v22 = vld [vmem:[#allocation8 + $0x4c8] sm:$0xff]  ;;  %v999_v50 = vld [vmem:[#allocation8 + $0x400] sm:$0xff] }
  0xf0   : > { %1156 = vmatpush1.msra.mxu0 %v919_v39  ;;  %1226 = vmatprep.subr.mxu1 %v1048_v54  ;;  %v876_v25 = vld [vmem:[#allocation8 + $0x28] sm:$0xff]  ;;  %v1123_v54 = vld [vmem:[#allocation8 + $0x7e0] sm:$0xff] }
  0xf1   : > { %1157 = vmatprep.subr.mxu0 %v916_v40  ;;  %1227 = vmatpush1.msra.mxu1 %v1047_v57  ;;  %v1020_v26 = vld [vmem:[#allocation8 + $0x4a8] sm:$0xff]  ;;  %v991_v40 = vld [vmem:[#allocation8 + $0x3c0] sm:$0xff] }
  0xf2   : > { %1158 = vmatpush1.msra.mxu0 %v915_v42  ;;  %1228 = vmatprep.subr.mxu1 %v1044_v59  ;;  %v872_v29 = vld [vmem:[#allocation8 + $0x8] sm:$0xff]  ;;  %v1119_v59 = vld [vmem:[#allocation8 + $0x7c0] sm:$0xff] }
  0xf3   : > { %1159 = vmatprep.subr.mxu0 %v912_v44  ;;  %1229 = vmatpush1.msra.mxu1 %v1043_v62  ;;  %v1016_v30 = vld [vmem:[#allocation8 + $0x488] sm:$0xff]  ;;  %v987_v44 = vld [vmem:[#allocation8 + $0x3a0] sm:$0xff] }
  0xf4   : > { %1160 = vmatpush1.msra.mxu0 %v911_v46  ;;  %1230 = vmatprep.subr.mxu1 %v1040_v1  ;;  %v996_v33 = vld [vmem:[#allocation8 + $0x3e8] sm:$0xff]  ;;  %v1115_v1 = vld [vmem:[#allocation8 + $0x7a0] sm:$0xff] }
  0xf5   : > { %1161 = vmatprep.subr.mxu0 %v908_v49  ;;  %1231 = vmatpush1.msra.mxu1 %v1039_v4  ;;  %v1012_v34 = vld [vmem:[#allocation8 + $0x468] sm:$0xff]  ;;  %v983_v49 = vld [vmem:[#allocation8 + $0x380] sm:$0xff] }
  0xf6   : > { %1162 = vmatpush1.msra.mxu0 %v907_v51  ;;  %1232 = vmatprep.subr.mxu1 %v1036_v8  ;;  %v992_v37 = vld [vmem:[#allocation8 + $0x3c8] sm:$0xff]  ;;  %v1111_v8 = vld [vmem:[#allocation8 + $0x780] sm:$0xff] }
  0xf7   : > { %1163 = vmatprep.subr.mxu0 %v904_v53  ;;  %1233 = vmatpush1.msra.mxu1 %v1035_v12  ;;  %v1008_v39 = vld [vmem:[#allocation8 + $0x448] sm:$0xff]  ;;  %v979_v53 = vld [vmem:[#allocation8 + $0x360] sm:$0xff] }
  0xf8   : > { %1164 = vmatpush1.msra.mxu0 %v903_v55  ;;  %1234 = vmatprep.subr.mxu1 %v1032_v14  ;;  %v988_v42 = vld [vmem:[#allocation8 + $0x3a8] sm:$0xff]  ;;  %v1107_v14 = vld [vmem:[#allocation8 + $0x760] sm:$0xff] }
  0xf9   : > { %1165 = vmatprep.subr.mxu0 %v900_v58  ;;  %1235 = vmatpush1.msra.mxu1 %v1031_v16  ;;  %v1004_v43 = vld [vmem:[#allocation8 + $0x428] sm:$0xff]  ;;  %v975_v58 = vld [vmem:[#allocation8 + $0x340] sm:$0xff] }
  0xfa   : > { %1166 = vmatpush1.msra.mxu0 %v899_v61  ;;  %1236 = vmatprep.subr.mxu1 %v1028_v18  ;;  %v984_v46 = vld [vmem:[#allocation8 + $0x388] sm:$0xff]  ;;  %v1103_v18 = vld [vmem:[#allocation8 + $0x740] sm:$0xff] }
  0xfb   : > { %1167 = vmatprep.subr.mxu0 %v896_v0  ;;  %1237 = vmatpush1.msra.mxu1 %v1027_v20  ;;  %v1000_v48 = vld [vmem:[#allocation8 + $0x408] sm:$0xff]  ;;  %v971_v0 = vld [vmem:[#allocation8 + $0x320] sm:$0xff] }
  0xfc   : > { %1168 = vmatpush1.msra.mxu0 %v895_v3  ;;  %1238 = vmatprep.subr.mxu1 %v1024_v22  ;;  %v980_v51 = vld [vmem:[#allocation8 + $0x368] sm:$0xff]  ;;  %v1099_v22 = vld [vmem:[#allocation8 + $0x720] sm:$0xff] }
  0xfd   : > { %1169 = vmatprep.subr.mxu0 %v892_v6  ;;  %1239 = vmatpush1.msra.mxu1 %v1023_v24  ;;  %v1124_v52 = vld [vmem:[#allocation8 + $0x7e8] sm:$0xff]  ;;  %v967_v6 = vld [vmem:[#allocation8 + $0x300] sm:$0xff] }
  0xfe   : > { %1170 = vmatpush1.msra.mxu0 %v891_v10  ;;  %1240 = vmatprep.subr.mxu1 %v1020_v26  ;;  %v976_v55 = vld [vmem:[#allocation8 + $0x348] sm:$0xff]  ;;  %v1095_v26 = vld [vmem:[#allocation8 + $0x700] sm:$0xff] }
  0xff   : > { %1171 = vmatprep.subr.mxu0 %v888_v13  ;;  %1241 = vmatpush1.msra.mxu1 %v1019_v28  ;;  %v1120_v57 = vld [vmem:[#allocation8 + $0x7c8] sm:$0xff]  ;;  %v963_v13 = vld [vmem:[#allocation8 + $0x2e0] sm:$0xff] }
 0x100   : > { %1172 = vmatpush1.msra.mxu0 %v887_v15  ;;  %1242 = vmatprep.subr.mxu1 %v1016_v30  ;;  %v972_v61 = vld [vmem:[#allocation8 + $0x328] sm:$0xff]  ;;  %v1091_v30 = vld [vmem:[#allocation8 + $0x6e0] sm:$0xff] }
 0x101   : > { %1173 = vmatprep.subr.mxu0 %v884_v17  ;;  %1243 = vmatpush1.msra.mxu1 %v1015_v32  ;;  %v1116_v62 = vld [vmem:[#allocation8 + $0x7a8] sm:$0xff]  ;;  %v959_v17 = vld [vmem:[#allocation8 + $0x2c0] sm:$0xff] }
 0x102   : > { %1174 = vmatpush1.msra.mxu0 %v883_v19  ;;  %1244 = vmatprep.subr.mxu1 %v1012_v34  ;;  %v968_v3 = vld [vmem:[#allocation8 + $0x308] sm:$0xff]  ;;  %v1087_v34 = vld [vmem:[#allocation8 + $0x6c0] sm:$0xff] }
 0x103   : > { %1175 = vmatprep.subr.mxu0 %v880_v21  ;;  %1245 = vmatpush1.msra.mxu1 %v1011_v36  ;;  %v1112_v4 = vld [vmem:[#allocation8 + $0x788] sm:$0xff]  ;;  %v955_v21 = vld [vmem:[#allocation8 + $0x2a0] sm:$0xff] }
 0x104   : > { %1176 = vmatpush1.msra.mxu0 %v879_v23  ;;  %1246 = vmatprep.subr.mxu1 %v1008_v39  ;;  %v964_v10 = vld [vmem:[#allocation8 + $0x2e8] sm:$0xff]  ;;  %v1083_v39 = vld [vmem:[#allocation8 + $0x6a0] sm:$0xff] }
 0x105   : > { %1177 = vmatprep.subr.mxu0 %v876_v25  ;;  %1247 = vmatpush1.msra.mxu1 %v1007_v41  ;;  %v1108_v12 = vld [vmem:[#allocation8 + $0x768] sm:$0xff]  ;;  %v951_v25 = vld [vmem:[#allocation8 + $0x280] sm:$0xff] }
 0x106   : > { %1178 = vmatpush1.msra.mxu0 %v875_v27  ;;  %1248 = vmatprep.subr.mxu1 %v1004_v43  ;;  %v960_v15 = vld [vmem:[#allocation8 + $0x2c8] sm:$0xff]  ;;  %v934_v43 = vld [vmem:[#allocation8 + $0x1f8] sm:$0xff] }
 0x107   : > { %1179 = vmatprep.subr.mxu0 %v872_v29  ;;  %1249 = vmatpush1.msra.mxu1 %v1003_v45  ;;  %v1104_v16 = vld [vmem:[#allocation8 + $0x748] sm:$0xff]  ;;  %v947_v29 = vld [vmem:[#allocation8 + $0x260] sm:$0xff] }
 0x108   : > { %1180 = vmatpush1.msra.mxu0 %v871_v31  ;;  %1250 = vmatprep.subr.mxu1 %v1000_v48  ;;  %v956_v19 = vld [vmem:[#allocation8 + $0x2a8] sm:$0xff] }
 0x109   : > { %1181 = vmatprep.subr.mxu0 %v996_v33  ;;  %1251 = vmatpush1.msra.mxu1 %v999_v50  ;;  %v1100_v20 = vld [vmem:[#allocation8 + $0x728] sm:$0xff]  ;;  %v943_v33 = vld [vmem:[#allocation8 + $0x240] sm:$0xff] }
 0x10a   : > { %1182 = vmatpush2.msra.mxu0 %v995_v35  ;;  %1252 = vmatprep.subr.mxu1 %v1124_v52  ;;  %v952_v23 = vld [vmem:[#allocation8 + $0x288] sm:$0xff] }
 0x10b   : > { %1183 = vmatprep.subr.mxu0 %v992_v37  ;;  %1253 = vmatpush2.msra.mxu1 %v1123_v54  ;;  %v1096_v24 = vld [vmem:[#allocation8 + $0x708] sm:$0xff]  ;;  %v939_v37 = vld [vmem:[#allocation8 + $0x220] sm:$0xff]  ;;  %v1062_v54 = vld [vmem:[#allocation8 + $0x5f8] sm:$0xff] }
 0x10c   : > { %1184 = vmatpush2.msra.mxu0 %v991_v40  ;;  %1254 = vmatprep.subr.mxu1 %v1120_v57  ;;  %v948_v27 = vld [vmem:[#allocation8 + $0x268] sm:$0xff] }
 0x10d   : > { %1185 = vmatprep.subr.mxu0 %v988_v42  ;;  %1255 = vmatpush2.msra.mxu1 %v1119_v59  ;;  %v1092_v28 = vld [vmem:[#allocation8 + $0x6e8] sm:$0xff]  ;;  %v935_v42 = vld [vmem:[#allocation8 + $0x200] sm:$0xff] }
 0x10e   : > { %1186 = vmatpush2.msra.mxu0 %v987_v44  ;;  %1256 = vmatprep.subr.mxu1 %v1116_v62  ;;  %v944_v31 = vld [vmem:[#allocation8 + $0x248] sm:$0xff]  ;;  %v1079_v44 = vld [vmem:[#allocation8 + $0x680] sm:$0xff] }
 0x10f   : > { %1187 = vmatprep.subr.mxu0 %v984_v46  ;;  %1257 = vmatpush2.msra.mxu1 %v1115_v1  ;;  %v1088_v32 = vld [vmem:[#allocation8 + $0x6c8] sm:$0xff]  ;;  %v1075_v46 = vld [vmem:[#allocation8 + $0x660] sm:$0xff] }
 0x110   : > { %1188 = vmatpush2.msra.mxu0 %v983_v49  ;;  %1258 = vmatprep.subr.mxu1 %v1112_v4  ;;  %v940_v35 = vld [vmem:[#allocation8 + $0x228] sm:$0xff]  ;;  %v1071_v49 = vld [vmem:[#allocation8 + $0x640] sm:$0xff] }
 0x111   : > { %1189 = vmatprep.subr.mxu0 %v980_v51  ;;  %1259 = vmatpush2.msra.mxu1 %v1111_v8  ;;  %v1084_v36 = vld [vmem:[#allocation8 + $0x6a8] sm:$0xff]  ;;  %v1067_v51 = vld [vmem:[#allocation8 + $0x620] sm:$0xff] }
 0x112   : > { %1190 = vmatpush2.msra.mxu0 %v979_v53  ;;  %1260 = vmatprep.subr.mxu1 %v1108_v12  ;;  %v936_v40 = vld [vmem:[#allocation8 + $0x208] sm:$0xff]  ;;  %v1063_v53 = vld [vmem:[#allocation8 + $0x600] sm:$0xff]  ;;  %v933_v12 = vld [vmem:[#allocation8 + $0x1f0] sm:$0xff] }
 0x113   : > { %1191 = vmatprep.subr.mxu0 %v976_v55  ;;  %1261 = vmatpush2.msra.mxu1 %v1107_v14  ;;  %v1080_v41 = vld [vmem:[#allocation8 + $0x688] sm:$0xff]  ;;  %v2091_v55 = vld [vmem:[#allocation7] sm:$0xf]  ;;  %v929_v14 = vld [vmem:[#allocation8 + $0x1d0] sm:$0xff] }
 0x114   : > { %1192 = vmatpush2.msra.mxu0 %v975_v58  ;;  %1262 = vmatprep.subr.mxu1 %v1104_v16  ;;  %v1076_v45 = vld [vmem:[#allocation8 + $0x668] sm:$0xff]  ;;  %v566_v57 = vrot.slane %v2091_v55, %v2063_v60  ;;  %v570_v58 = vrot.slane %v2091_v55, %v2059_v56  ;;  %v925_v16 = vld [vmem:[#allocation8 + $0x1b0] sm:$0xff] }
 0x115   : > { %1193 = vmatprep.subr.mxu0 %v972_v61  ;;  %1263 = vmatpush2.msra.mxu1 %v1103_v18  ;;  %v1072_v48 = vld [vmem:[#allocation8 + $0x648] sm:$0xff]  ;;  %v921_v18 = vld [vmem:[#allocation8 + $0x190] sm:$0xff] }
 0x116   : > { %1194 = vmatpush2.msra.mxu0 %v971_v0  ;;  %1264 = vmatprep.subr.mxu1 %v1100_v20  ;;  %v1068_v50 = vld [vmem:[#allocation8 + $0x628] sm:$0xff]  ;;  %v917_v20 = vld [vmem:[#allocation8 + $0x170] sm:$0xff] }
 0x117   : > { %1195 = vmatprep.subr.mxu0 %v968_v3  ;;  %1265 = vmatpush2.msra.mxu1 %v1099_v22  ;;  %v1064_v52 = vld [vmem:[#allocation8 + $0x608] sm:$0xff]  ;;  %v913_v22 = vld [vmem:[#allocation8 + $0x150] sm:$0xff] }
 0x118   : > { %1196 = vmatpush2.msra.mxu0 %v967_v6  ;;  %1266 = vmatprep.subr.mxu1 %v1096_v24  ;;  %v909_v24 = vld [vmem:[#allocation8 + $0x130] sm:$0xff] }
 0x119   : > { %1197 = vmatprep.subr.mxu0 %v964_v10  ;;  %1267 = vmatpush2.msra.mxu1 %v1095_v26  ;;  %v905_v26 = vld [vmem:[#allocation8 + $0x110] sm:$0xff] }
 0x11a   : > { %1198 = vmatpush2.msra.mxu0 %v963_v13  ;;  %1268 = vmatprep.subr.mxu1 %v1092_v28  ;;  %v930_v13 = vld [vmem:[#allocation8 + $0x1d8] sm:$0xff]  ;;  %v901_v28 = vld [vmem:[#allocation8 + $0xf0] sm:$0xff] }
 0x11b   : > { %1199 = vmatprep.subr.mxu0 %v960_v15  ;;  %1269 = vmatpush2.msra.mxu1 %v1091_v30  ;;  %v926_v15 = vld [vmem:[#allocation8 + $0x1b8] sm:$0xff]  ;;  %v897_v30 = vld [vmem:[#allocation8 + $0xd0] sm:$0xff] }
 0x11c   : > { %1200 = vmatpush2.msra.mxu0 %v959_v17  ;;  %1270 = vmatprep.subr.mxu1 %v1088_v32  ;;  %v922_v17 = vld [vmem:[#allocation8 + $0x198] sm:$0xff]  ;;  %v893_v32 = vld [vmem:[#allocation8 + $0xb0] sm:$0xff] }
 0x11d   : > { %1201 = vmatprep.subr.mxu0 %v956_v19  ;;  %1271 = vmatpush2.msra.mxu1 %v1087_v34  ;;  %v918_v19 = vld [vmem:[#allocation8 + $0x178] sm:$0xff]  ;;  %v889_v34 = vld [vmem:[#allocation8 + $0x90] sm:$0xff] }
 0x11e   : > { %1202 = vmatpush2.msra.mxu0 %v955_v21  ;;  %1272 = vmatprep.subr.mxu1 %v1084_v36  ;;  %v914_v21 = vld [vmem:[#allocation8 + $0x158] sm:$0xff]  ;;  %v885_v36 = vld [vmem:[#allocation8 + $0x70] sm:$0xff] }
 0x11f   : > { %1203 = vmatprep.subr.mxu0 %v952_v23  ;;  %1273 = vmatpush2.msra.mxu1 %v1083_v39  ;;  %v910_v23 = vld [vmem:[#allocation8 + $0x138] sm:$0xff]  ;;  %v881_v39 = vld [vmem:[#allocation8 + $0x50] sm:$0xff] }
 0x120   : > { %1204 = vmatpush2.msra.mxu0 %v951_v25  ;;  %1274 = vmatprep.subr.mxu1 %v1080_v41  ;;  %v906_v25 = vld [vmem:[#allocation8 + $0x118] sm:$0xff]  ;;  %v877_v41 = vld [vmem:[#allocation8 + $0x30] sm:$0xff] }
 0x121   : > { %1205 = vmatprep.subr.mxu0 %v948_v27  ;;  %1275 = vmatpush2.msra.mxu1 %v1079_v44  ;;  %v902_v27 = vld [vmem:[#allocation8 + $0xf8] sm:$0xff] }
 0x122   : > { %1206 = vmatpush2.msra.mxu0 %v947_v29  ;;  %1276 = vmatprep.subr.mxu1 %v1076_v45  ;;  %v898_v29 = vld [vmem:[#allocation8 + $0xd8] sm:$0xff]  ;;  %v997_v45 = vld [vmem:[#allocation8 + $0x3f0] sm:$0xff] }
 0x123   : > { %1207 = vmatprep.subr.mxu0 %v944_v31  ;;  %1277 = vmatpush2.msra.mxu1 %v1075_v46  ;;  %v894_v31 = vld [vmem:[#allocation8 + $0xb8] sm:$0xff] }
 0x124   : > { %1208 = vmatpush2.msra.mxu0 %v943_v33  ;;  %1278 = vmatprep.subr.mxu1 %v1072_v48  ;;  %v890_v33 = vld [vmem:[#allocation8 + $0x98] sm:$0xff]  ;;  %v993_v48 = vld [vmem:[#allocation8 + $0x3d0] sm:$0xff] }
 0x125   : > { %1209 = vmatprep.subr.mxu0 %v940_v35  ;;  %1279 = vmatpush2.msra.mxu1 %v1071_v49  ;;  %v886_v35 = vld [vmem:[#allocation8 + $0x78] sm:$0xff] }
 0x126   : > { %1210 = vmatpush2.msra.mxu0 %v939_v37  ;;  %1280 = vmatprep.subr.mxu1 %v1068_v50  ;;  %v882_v37 = vld [vmem:[#allocation8 + $0x58] sm:$0xff]  ;;  %v989_v50 = vld [vmem:[#allocation8 + $0x3b0] sm:$0xff] }
 0x127   : > { %1211 = vmatprep.subr.mxu0 %v936_v40  ;;  %1281 = vmatpush2.msra.mxu1 %v1067_v51  ;;  %v878_v40 = vld [vmem:[#allocation8 + $0x38] sm:$0xff] }
 0x128   : > { %1212 = vmatpush2.msra.mxu0 %v935_v42  ;;  %1282 = vmatprep.subr.mxu1 %v1064_v52  ;;  %v874_v42 = vld [vmem:[#allocation8 + $0x18] sm:$0xff]  ;;  %v985_v52 = vld [vmem:[#allocation8 + $0x390] sm:$0xff] }
 0x129   : > { %1291 = vmatprep.subr.mxu0 %v934_v43  ;;  %1283 = vmatpush2.msra.mxu1 %v1063_v53  ;;  %v873_v43 = vld [vmem:[#allocation8 + $0x10] sm:$0xff]  ;;  %v998_v44 = vld [vmem:[#allocation8 + $0x3f8] sm:$0xff] }
 0x12a   : > { %1362 = vmatprep.subr.mxu1 %v1062_v54  ;;  %v994_v46 = vld [vmem:[#allocation8 + $0x3d8] sm:$0xff]  ;;  %v981_v54 = vld [vmem:[#allocation8 + $0x370] sm:$0xff] }
 0x12b   : > { %v990_v49 = vld [vmem:[#allocation8 + $0x3b8] sm:$0xff] }
 0x12c   : > { %v986_v51 = vld [vmem:[#allocation8 + $0x398] sm:$0xff] }
 0x12d   : > { %v982_v53 = vld [vmem:[#allocation8 + $0x378] sm:$0xff] }
 0x166   : > { %v649_v59 = vpop.f32.mrf.mxu0 }
 0x167   : > { %v650_v61 = vadd.f32 %v649_v59, %v566_v57  ;;  %v978_v57 = vld [vmem:[#allocation8 + $0x358] sm:$0xff] }
 0x168   : > { %v720_v62 = vpop.f32.mrf.mxu1  ;;  %v651_v0 = vpop.f32.mrf.mxu0  ;;  %v974_v59 = vld [vmem:[#allocation8 + $0x338] sm:$0xff] }
 0x169   : > { %v652_v1 = vadd.f32 %v651_v0, %v570_v58  ;;  %v2097_v3 = vadd.f32 %v720_v62, %v650_v61  ;;  %v977_v58 = vld [vmem:[#allocation8 + $0x350] sm:$0xff]  ;;  %v970_v62 = vld [vmem:[#allocation8 + $0x318] sm:$0xff] }
 0x16a   : > { %v722_v4 = vpop.f32.mrf.mxu1  ;;  %v973_v61 = vld [vmem:[#allocation8 + $0x330] sm:$0xff] }
 0x16b   : > { %v723_v6 = vadd.f32 %v722_v4, %v652_v1  ;;  %v867_v10 = vmax.f32 %v2097_v3, 0.0  ;;  %v969_v0 = vld [vmem:[#allocation8 + $0x310] sm:$0xff]  ;;  %v966_v1 = vld [vmem:[#allocation8 + $0x2f8] sm:$0xff] }
 0x16c   : > { %v965_v4 = vld [vmem:[#allocation8 + $0x2f0] sm:$0xff]  ;;  %v1046_v3 = vld [vmem:[#allocation8 + $0x578] sm:$0xff] }
 0x16d   : > { %v868_v8 = vmax.f32 %v723_v6, 0.0  ;;  %v962_v6 = vld [vmem:[#allocation8 + $0x2d8] sm:$0xff] }
 0x16f   : > { %1213 = vmatprep.mubr.f32.mxu0 %v868_v8 }
 0x170   : > { %1214 = vmatmul.mubr.f32.vlgmr.msra.gmra.mxu0 %v867_v10 }
 0x171   : > { %1292 = vmatpush1.msra.mxu0 %v933_v12  ;;  %1355 = vmatprep.mubr.f32.mxu0 %v868_v8  ;;  %v961_v8 = vld [vmem:[#allocation8 + $0x2d0] sm:$0xff]  ;;  %v958_v12 = vld [vmem:[#allocation8 + $0x2b8] sm:$0xff] }
 0x172   : > { %1293 = vmatprep.subr.mxu0 %v930_v13  ;;  %v957_v13 = vld [vmem:[#allocation8 + $0x2b0] sm:$0xff] }
 0x173   : > { %1294 = vmatpush1.msra.mxu0 %v929_v14  ;;  %v954_v14 = vld [vmem:[#allocation8 + $0x298] sm:$0xff] }
 0x174   : > { %1295 = vmatprep.subr.mxu0 %v926_v15  ;;  %v953_v15 = vld [vmem:[#allocation8 + $0x290] sm:$0xff] }
 0x175   : > { %1296 = vmatpush1.msra.mxu0 %v925_v16  ;;  %v950_v16 = vld [vmem:[#allocation8 + $0x278] sm:$0xff] }
 0x176   : > { %1297 = vmatprep.subr.mxu0 %v922_v17  ;;  %v574_v17 = vrot.slane %v2091_v55, %v2069_v2 }
 0x177   : > { %1298 = vmatpush1.msra.mxu0 %v921_v18  ;;  %v949_v18 = vld [vmem:[#allocation8 + $0x270] sm:$0xff] }
 0x178   : > { %1299 = vmatprep.subr.mxu0 %v918_v19  ;;  %v946_v19 = vld [vmem:[#allocation8 + $0x258] sm:$0xff] }
 0x179   : > { %1300 = vmatpush1.msra.mxu0 %v917_v20  ;;  %v578_v20 = vrot.slane %v2091_v55, %v2066_v63 }
 0x17a   : > { %1301 = vmatprep.subr.mxu0 %v914_v21  ;;  %v945_v21 = vld [vmem:[#allocation8 + $0x250] sm:$0xff] }
 0x17b   : > { %1302 = vmatpush1.msra.mxu0 %v913_v22 }
 0x17c   : > { %1303 = vmatprep.subr.mxu0 %v910_v23 }
 0x17d   : > { %1304 = vmatpush1.msra.mxu0 %v909_v24  ;;  %v942_v24 = vld [vmem:[#allocation8 + $0x238] sm:$0xff] }
 0x17e   : > { %1305 = vmatprep.subr.mxu0 %v906_v25 }
 0x17f   : > { %1306 = vmatpush1.msra.mxu0 %v905_v26  ;;  %v941_v26 = vld [vmem:[#allocation8 + $0x230] sm:$0xff] }
 0x180   : > { %1307 = vmatprep.subr.mxu0 %v902_v27 }
 0x181   : > { %1308 = vmatpush1.msra.mxu0 %v901_v28  ;;  %v938_v28 = vld [vmem:[#allocation8 + $0x218] sm:$0xff] }
 0x182   : > { %1309 = vmatprep.subr.mxu0 %v898_v29 }
 0x183   : > { %1310 = vmatpush1.msra.mxu0 %v897_v30  ;;  %v937_v30 = vld [vmem:[#allocation8 + $0x210] sm:$0xff] }
 0x184   : > { %1311 = vmatprep.subr.mxu0 %v894_v31 }
 0x185   : > { %1312 = vmatpush1.msra.mxu0 %v893_v32 }
 0x186   : > { %1313 = vmatprep.subr.mxu0 %v890_v33 }
 0x187   : > { %1314 = vmatpush1.msra.mxu0 %v889_v34 }
 0x188   : > { %1315 = vmatprep.subr.mxu0 %v886_v35  ;;  %v1061_v35 = vld [vmem:[#allocation8 + $0x5f0] sm:$0xff] }
 0x189   : > { %1316 = vmatpush1.msra.mxu0 %v885_v36  ;;  %v1058_v36 = vld [vmem:[#allocation8 + $0x5d8] sm:$0xff] }
 0x18a   : > { %1317 = vmatprep.subr.mxu0 %v882_v37  ;;  %v1057_v37 = vld [vmem:[#allocation8 + $0x5d0] sm:$0xff] }
 0x18b   : > { %1318 = vmatpush1.msra.mxu0 %v881_v39  ;;  %v1054_v39 = vld [vmem:[#allocation8 + $0x5b8] sm:$0xff] }
 0x18c   : > { %1319 = vmatprep.subr.mxu0 %v878_v40  ;;  %v1053_v40 = vld [vmem:[#allocation8 + $0x5b0] sm:$0xff] }
 0x18d   : > { %1320 = vmatpush1.msra.mxu0 %v877_v41  ;;  %v1050_v41 = vld [vmem:[#allocation8 + $0x598] sm:$0xff] }
 0x18e   : > { %1321 = vmatprep.subr.mxu0 %v874_v42  ;;  %v1049_v42 = vld [vmem:[#allocation8 + $0x590] sm:$0xff] }
 0x18f   : > { %1322 = vmatpush1.msra.mxu0 %v873_v43  ;;  %v1042_v43 = vld [vmem:[#allocation8 + $0x558] sm:$0xff] }
 0x190   : > { %1323 = vmatprep.subr.mxu0 %v998_v44  ;;  %v1041_v44 = vld [vmem:[#allocation8 + $0x550] sm:$0xff] }
 0x191   : > { %1324 = vmatpush2.msra.mxu0 %v997_v45  ;;  %v1038_v45 = vld [vmem:[#allocation8 + $0x538] sm:$0xff] }
 0x192   : > { %1325 = vmatprep.subr.mxu0 %v994_v46  ;;  %v1037_v46 = vld [vmem:[#allocation8 + $0x530] sm:$0xff] }
 0x193   : > { %1326 = vmatpush2.msra.mxu0 %v993_v48  ;;  %v1034_v48 = vld [vmem:[#allocation8 + $0x518] sm:$0xff] }
 0x194   : > { %1327 = vmatprep.subr.mxu0 %v990_v49  ;;  %v1033_v49 = vld [vmem:[#allocation8 + $0x510] sm:$0xff] }
 0x195   : > { %1328 = vmatpush2.msra.mxu0 %v989_v50  ;;  %v1030_v50 = vld [vmem:[#allocation8 + $0x4f8] sm:$0xff] }
 0x196   : > { %1329 = vmatprep.subr.mxu0 %v986_v51  ;;  %v1029_v51 = vld [vmem:[#allocation8 + $0x4f0] sm:$0xff] }
 0x197   : > { %1330 = vmatpush2.msra.mxu0 %v985_v52  ;;  %v1026_v52 = vld [vmem:[#allocation8 + $0x4d8] sm:$0xff] }
 0x198   : > { %1331 = vmatprep.subr.mxu0 %v982_v53  ;;  %v1025_v53 = vld [vmem:[#allocation8 + $0x4d0] sm:$0xff] }
 0x199   : > { %1332 = vmatpush2.msra.mxu0 %v981_v54  ;;  %v1022_v54 = vld [vmem:[#allocation8 + $0x4b8] sm:$0xff] }
 0x19a   : > { %1333 = vmatprep.subr.mxu0 %v978_v57  ;;  %v1021_v57 = vld [vmem:[#allocation8 + $0x4b0] sm:$0xff] }
 0x19b   : > { %1334 = vmatpush2.msra.mxu0 %v977_v58  ;;  %v1018_v58 = vld [vmem:[#allocation8 + $0x498] sm:$0xff] }
 0x19c   : > { %1335 = vmatprep.subr.mxu0 %v974_v59  ;;  %v1017_v59 = vld [vmem:[#allocation8 + $0x490] sm:$0xff] }
 0x19d   : > { %1336 = vmatpush2.msra.mxu0 %v973_v61  ;;  %v1014_v61 = vld [vmem:[#allocation8 + $0x478] sm:$0xff] }
 0x19e   : > { %1337 = vmatprep.subr.mxu0 %v970_v62  ;;  %v1013_v62 = vld [vmem:[#allocation8 + $0x470] sm:$0xff] }
 0x19f   : > { %1338 = vmatpush2.msra.mxu0 %v969_v0  ;;  %v1010_v0 = vld [vmem:[#allocation8 + $0x458] sm:$0xff] }
 0x1a0   : > { %1339 = vmatprep.subr.mxu0 %v966_v1  ;;  %v1009_v1 = vld [vmem:[#allocation8 + $0x450] sm:$0xff] }
 0x1a1   : > { %1340 = vmatpush2.msra.mxu0 %v965_v4  ;;  %v1006_v4 = vld [vmem:[#allocation8 + $0x438] sm:$0xff] }
 0x1a2   : > { %1341 = vmatprep.subr.mxu0 %v962_v6  ;;  %v1005_v6 = vld [vmem:[#allocation8 + $0x430] sm:$0xff] }
 0x1a3   : > { %1342 = vmatpush2.msra.mxu0 %v961_v8  ;;  %v1002_v8 = vld [vmem:[#allocation8 + $0x418] sm:$0xff] }
 0x1a4   : > { %1343 = vmatprep.subr.mxu0 %v958_v12  ;;  %v1001_v12 = vld [vmem:[#allocation8 + $0x410] sm:$0xff] }
 0x1a5   : > { %1344 = vmatpush2.msra.mxu0 %v957_v13  ;;  %v1126_v13 = vld [vmem:[#allocation8 + $0x7f8] sm:$0xff] }
 0x1a6   : > { %1345 = vmatprep.subr.mxu0 %v954_v14  ;;  %v1125_v14 = vld [vmem:[#allocation8 + $0x7f0] sm:$0xff] }
 0x1a7   : > { %1346 = vmatpush2.msra.mxu0 %v953_v15  ;;  %v1122_v15 = vld [vmem:[#allocation8 + $0x7d8] sm:$0xff] }
 0x1a8   : > { %1347 = vmatprep.subr.mxu0 %v950_v16  ;;  %v791_v22 = vpop.f32.mrf.mxu0  ;;  %v1121_v16 = vld [vmem:[#allocation8 + $0x7d0] sm:$0xff] }
 0x1a9   : > { %v862_v23 = vpop.f32.mrf.mxu1  ;;  %1348 = vmatpush2.msra.mxu0 %v949_v18  ;;  %v792_v25 = vadd.f32 %v791_v22, %v574_v17  ;;  %v1118_v17 = vld [vmem:[#allocation8 + $0x7b8] sm:$0xff]  ;;  %v1117_v18 = vld [vmem:[#allocation8 + $0x7b0] sm:$0xff] }
 0x1aa   : > { %1349 = vmatprep.subr.mxu0 %v946_v19  ;;  %v793_v27 = vpop.f32.mrf.mxu0  ;;  %v1114_v19 = vld [vmem:[#allocation8 + $0x798] sm:$0xff]  ;;  %v1109_v22 = vld [vmem:[#allocation8 + $0x770] sm:$0xff] }
 0x1ab   : > { %1350 = vmatpush2.msra.mxu0 %v945_v21  ;;  %v794_v29 = vadd.f32 %v793_v27, %v578_v20  ;;  %v2106_v31 = vadd.f32 %v862_v23, %v792_v25  ;;  %v864_v32 = vpop.f32.mrf.mxu1  ;;  %v1113_v20 = vld [vmem:[#allocation8 + $0x790] sm:$0xff]  ;;  %v1110_v21 = vld [vmem:[#allocation8 + $0x778] sm:$0xff] }
 0x1ac   : > { %1351 = vmatprep.subr.mxu0 %v942_v24  ;;  %v1106_v23 = vld [vmem:[#allocation8 + $0x758] sm:$0xff]  ;;  %v1105_v24 = vld [vmem:[#allocation8 + $0x750] sm:$0xff] }
 0x1ad   : > { %1352 = vmatpush2.msra.mxu0 %v941_v26  ;;  %v865_v33 = vadd.f32 %v864_v32, %v794_v29  ;;  %v869_v34 = vmax.f32 %v2106_v31, 0.0  ;;  %v1102_v25 = vld [vmem:[#allocation8 + $0x738] sm:$0xff]  ;;  %v1101_v26 = vld [vmem:[#allocation8 + $0x730] sm:$0xff] }
 0x1ae   : > { %1353 = vmatprep.subr.mxu0 %v938_v28  ;;  %v1098_v27 = vld [vmem:[#allocation8 + $0x718] sm:$0xff]  ;;  %v1097_v28 = vld [vmem:[#allocation8 + $0x710] sm:$0xff] }
 0x1af   : > { %1354 = vmatpush2.msra.mxu0 %v937_v30  ;;  %v870_v55 = vmax.f32 %v865_v33, 0.0  ;;  %v1094_v29 = vld [vmem:[#allocation8 + $0x6f8] sm:$0xff]  ;;  %v1093_v30 = vld [vmem:[#allocation8 + $0x6f0] sm:$0xff] }
 0x1b0   : > { %1356 = vmatmul.mubr.f32.vlgmr.msra.gmra.mxu0 %v867_v10  ;;  %v1045_v10 = vld [vmem:[#allocation8 + $0x570] sm:$0xff]  ;;  %v1090_v32 = vld [vmem:[#allocation8 + $0x6d8] sm:$0xff] }
 0x1b1   : > { %1284 = vmatprep.mubr.f32.mxu1 %v870_v55  ;;  %v1089_v33 = vld [vmem:[#allocation8 + $0x6d0] sm:$0xff] }
 0x1b2   : > { %1285 = vmatmul.mubr.f32.vlgmr.msra.gmra.mxu1 %v869_v34 }
 0x1b3   : > { %1363 = vmatpush1.msra.mxu1 %v1061_v35  ;;  %1426 = vmatprep.mubr.f32.mxu1 %v870_v55  ;;  %v1086_v55 = vld [vmem:[#allocation8 + $0x6b8] sm:$0xff]  ;;  %v1085_v35 = vld [vmem:[#allocation8 + $0x6b0] sm:$0xff] }
 0x1b4   : > { %1364 = vmatprep.subr.mxu1 %v1058_v36  ;;  %v1082_v36 = vld [vmem:[#allocation8 + $0x698] sm:$0xff] }
 0x1b5   : > { %1365 = vmatpush1.msra.mxu1 %v1057_v37  ;;  %v1081_v37 = vld [vmem:[#allocation8 + $0x690] sm:$0xff] }
 0x1b6   : > { %1366 = vmatprep.subr.mxu1 %v1054_v39  ;;  %v1078_v39 = vld [vmem:[#allocation8 + $0x678] sm:$0xff] }
 0x1b7   : > { %1367 = vmatpush1.msra.mxu1 %v1053_v40  ;;  %v1077_v40 = vld [vmem:[#allocation8 + $0x670] sm:$0xff] }
 0x1b8   : > { %1368 = vmatprep.subr.mxu1 %v1050_v41  ;;  %v1074_v41 = vld [vmem:[#allocation8 + $0x658] sm:$0xff] }
 0x1b9   : > { %1369 = vmatpush1.msra.mxu1 %v1049_v42  ;;  %v1073_v42 = vld [vmem:[#allocation8 + $0x650] sm:$0xff] }
 0x1ba   : > { %1370 = vmatprep.subr.mxu1 %v1046_v3  ;;  %v1070_v3 = vld [vmem:[#allocation8 + $0x638] sm:$0xff] }
 0x1bb   : > { %1371 = vmatpush1.msra.mxu1 %v1045_v10  ;;  %v1069_v10 = vld [vmem:[#allocation8 + $0x630] sm:$0xff] }
 0x1bc   : > { %1372 = vmatprep.subr.mxu1 %v1042_v43  ;;  %v1066_v43 = vld [vmem:[#allocation8 + $0x618] sm:$0xff] }
 0x1bd   : > { %1373 = vmatpush1.msra.mxu1 %v1041_v44  ;;  %v1065_v44 = vld [vmem:[#allocation8 + $0x610] sm:$0xff] }
 0x1be   : > { %1374 = vmatprep.subr.mxu1 %v1038_v45 }
 0x1bf   : > { %1375 = vmatpush1.msra.mxu1 %v1037_v46  ;;  %v1127_v46 = vld [vmem:[%s2169_s4] sm:$0xf] }
 0x1c0   : > { %1376 = vmatprep.subr.mxu1 %v1034_v48 }
 0x1c1   : > { %1377 = vmatpush1.msra.mxu1 %v1033_v49  ;;  %v1136_v49 = vrot.slane %v1127_v46, %v2059_v56 }
 0x1c2   : > { %1378 = vmatprep.subr.mxu1 %v1030_v50 }
 0x1c3   : > { %1379 = vmatpush1.msra.mxu1 %v1029_v51  ;;  %v1132_v51 = vrot.slane %v1127_v46, %v2063_v60 }
 0x1c4   : > { %1380 = vmatprep.subr.mxu1 %v1026_v52 }
 0x1c5   : > { %1381 = vmatpush1.msra.mxu1 %v1025_v53 }
 0x1c6   : > { %1382 = vmatprep.subr.mxu1 %v1022_v54 }
 0x1c7   : > { %1383 = vmatpush1.msra.mxu1 %v1021_v57 }
 0x1c8   : > { %1384 = vmatprep.subr.mxu1 %v1018_v58  ;;  %v1140_v58 = vrot.slane %v1127_v46, %v2069_v2 }
 0x1c9   : > { %1385 = vmatpush1.msra.mxu1 %v1017_v59 }
 0x1ca   : > { %1386 = vmatprep.subr.mxu1 %v1014_v61 }
 0x1cb   : > { %1387 = vmatpush1.msra.mxu1 %v1013_v62 }
 0x1cc   : > { %1388 = vmatprep.subr.mxu1 %v1010_v0 }
 0x1cd   : > { %1389 = vmatpush1.msra.mxu1 %v1009_v1  ;;  %v1877_v1 = vmov 1966171168  }
 0x1ce   : > { %1390 = vmatprep.subr.mxu1 %v1006_v4  ;;  %v1448_v4 = vunpack.c.l.s4 %v1877_v1 }
 0x1cf   : > { %1391 = vmatpush1.msra.mxu1 %v1005_v6 }
 0x1d0   : > { %1392 = vmatprep.subr.mxu1 %v1002_v8  ;;  %v1449_v2 = vunpack.c.0.s8 %v1448_v4 }
 0x1d1   : > { %1393 = vmatpush1.msra.mxu1 %v1001_v12 }
 0x1d2   : > { %1394 = vmatprep.subr.mxu1 %v1126_v13 }
 0x1d3   : > { %1395 = vmatpush2.msra.mxu1 %v1125_v14 }
 0x1d4   : > { %1396 = vmatprep.subr.mxu1 %v1122_v15 }
 0x1d5   : > { %1397 = vmatpush2.msra.mxu1 %v1121_v16 }
 0x1d6   : > { %1398 = vmatprep.subr.mxu1 %v1118_v17 }
 0x1d7   : > { %1399 = vmatpush2.msra.mxu1 %v1117_v18 }
 0x1d8   : > { %1400 = vmatprep.subr.mxu1 %v1114_v19 }
 0x1d9   : > { %1401 = vmatpush2.msra.mxu1 %v1113_v20 }
 0x1da   : > { %1402 = vmatprep.subr.mxu1 %v1110_v21 }
 0x1db   : > { %1403 = vmatpush2.msra.mxu1 %v1109_v22 }
 0x1dc   : > { %1404 = vmatprep.subr.mxu1 %v1106_v23 }
 0x1dd   : > { %1405 = vmatpush2.msra.mxu1 %v1105_v24 }
 0x1de   : > { %1406 = vmatprep.subr.mxu1 %v1102_v25 }
 0x1df   : > { %1407 = vmatpush2.msra.mxu1 %v1101_v26 }
 0x1e0   : > { %1408 = vmatprep.subr.mxu1 %v1098_v27 }
 0x1e1   : > { %1409 = vmatpush2.msra.mxu1 %v1097_v28 }
 0x1e2   : > { %1410 = vmatprep.subr.mxu1 %v1094_v29 }
 0x1e3   : > { %1411 = vmatpush2.msra.mxu1 %v1093_v30 }
 0x1e4   : > { %1412 = vmatprep.subr.mxu1 %v1090_v32 }
 0x1e5   : > { %1413 = vmatpush2.msra.mxu1 %v1089_v33 }
 0x1e6   : > { %1414 = vmatprep.subr.mxu1 %v1086_v55 }
 0x1e7   : > { %1415 = vmatpush2.msra.mxu1 %v1085_v35 }
 0x1e8   : > { %1416 = vmatprep.subr.mxu1 %v1082_v36 }
 0x1e9   : > { %1417 = vmatpush2.msra.mxu1 %v1081_v37 }
 0x1ea   : > { %1418 = vmatprep.subr.mxu1 %v1078_v39 }
 0x1eb   : > { %1419 = vmatpush2.msra.mxu1 %v1077_v40 }
 0x1ec   : > { %1420 = vmatprep.subr.mxu1 %v1074_v41 }
 0x1ed   : > { %1421 = vmatpush2.msra.mxu1 %v1073_v42 }
 0x1ee   : > { %1422 = vmatprep.subr.mxu1 %v1070_v3 }
 0x1ef   : > { %1423 = vmatpush2.msra.mxu1 %v1069_v10 }
 0x1f0   : > { %1424 = vmatprep.subr.mxu1 %v1066_v43 }
 0x1f1   : > { %1425 = vmatpush2.msra.mxu1 %v1065_v44 }
 0x1f2   : > { %1427 = vmatmul.mubr.f32.vlgmr.msra.gmra.mxu1 %v869_v34  ;;  %v1144_v34 = vrot.slane %v1127_v46, %v2066_v63 }
 0x230   : > { %v1215_v45 = vpop.f32.mrf.mxu0 }
 0x231   : > { %v1216_v57 = vadd.f32 %v1215_v45, %v1132_v51 }
 0x232   : > { %v1217_v50 = vpop.f32.mrf.mxu0 }
 0x233   : > { %v1218_v53 = vadd.f32 %v1217_v50, %v1136_v49 }
 0x270   : > { %v1357_v54 = vpop.f32.mrf.mxu0 }
 0x271   : > { %v1358_v62 = vadd.f32 %v1357_v54, %v1140_v58 }
 0x272   : > { %v1286_v48 = vpop.f32.mrf.mxu1  ;;  %v1359_v61 = vpop.f32.mrf.mxu0 }
 0x273   : > { %v1287_v31 = vadd.f32 %v1286_v48, %v1216_v57  ;;  %v1360_v60 = vadd.f32 %v1359_v61, %v1144_v34 }
 0x274   : > { %v1288_v52 = vpop.f32.mrf.mxu1 }
 0x275   : > { %v1289_v59 = vadd.f32 %v1288_v52, %v1218_v53  ;;  %v1433_v6 = vadd.f32 %v1287_v31, %v2075_v7 }
 0x277   : > { %v1434_v0 = vadd.f32 %v1289_v59, %v2072_v5  ;;  %v1437_v63 = vmax.f32 %v1433_v6, 0.0  ;;  %v1452_v5 = vsub.s32 %v1449_v2, %v2056_v47 }
 0x279   : > { %v1438_v13 = vmax.f32 %v1434_v0, 0.0 }
 0x27b   : > { %v1445_v17 = vcombine.low %v1437_v63, %v1438_v13 }
 0x27d   : > { %v1453_v20 = vrot.slane %v1445_v17, %v1452_v5 }
 0x2b2   : > { %v1428_v56 = vpop.f32.mrf.mxu1 }
 0x2b3   : > { %v1429_v8 = vadd.f32 %v1428_v56, %v1358_v62 }
 0x2b4   : > { %v1430_v12 = vpop.f32.mrf.mxu1 }
 0x2b5   : > { %v1435_v14 = vadd.f32 %v1429_v8, %v2081_v11  ;;  %v1431_v15 = vadd.f32 %v1430_v12, %v1360_v60 }
 0x2b7   : > { %v1436_v16 = vadd.f32 %v1431_v15, %v2078_v9  ;;  %v1439_v18 = vmax.f32 %v1435_v14, 0.0 }
 0x2b9   : > { %v1440_v19 = vmax.f32 %v1436_v16, 0.0 }
 0x2bb   : > { %v1446_v7 = vcombine.low %v1439_v18, %v1440_v19 }
 0x2bd   : > { %v1460_v21 = vrot.slane %v1446_v7, %v1452_v5 }
 0x2bf   : > { %v1461_v22 = vcombine.low %v1453_v20, %v1460_v21 }
 0x2c1   : > { %v1468_v11 = vrot.slane %v1461_v22, %v1452_v5 }
 0x2c3   : > { %1474 = vst.msk [vmem:[%s282_s15] sm:$0xf] %vm1472_vm0, %v1468_v11 }
 0x2c4   : > { %1810 = shalt.err (!%p1807_p9)
}
 0x2c5   : > { %s1811_s27 = scalar_lea.hbm %s1488_s8, 64  ;;  %s1815_s29 = scalar_lea.hbm %s2170_s5, 128 }
 0x2c6   : > { %p1812_p13 = scmp.ne.s32.totalorder %s1488_s8, %s1811_s27  ;;  %p1816_p11 = scmp.lt.s32.totalorder %s1488_s8, %s2170_s5 }
 0x2c7   : > { %p1817_p1 = scmp.lt.s32.totalorder %s1815_s29, %s1811_s27 }
 0x2c8   : > { %p1813_p8 = pnand %p1812_p13, %p2188_p6 }
 0x2c9   : > { %p1818_p2 = por %p1817_p1, %p1816_p11 }
 0x2ca   : > { %p1814_p10 = pneg %p1813_p8 }
 0x2cc   : > { %p1819_p4 = pnand %p1818_p2, %p1814_p10 }
 0x2ce   : > { %1822 = shalt.err (!%p1819_p4)
}
 0x2cf   : > { %1625 = dma.vmem_to_hbm [thread:$0]  (%p2188_p6), %s1491_s16, 64, %s1488_s8, %s1476_s10  }
 0x2d0 PF: > { %s1502_s13 = sand.u32 1, %s1857_s18   ;;  %p2189_p12 = scmp.ne.s32.totalorder %s2176_s25, 0 }
 0x2d1   : > { %p2190_p0 = scmp.ge.s32.totalorder %s1869_s21, 2  ;;  %s1503_s15 = scalar_lea.sflag [#allocation4], %s1502_s13 }
 0x2d3   : > { %p1642_p5 = pnand %p2190_p0, %p2189_p12 }
 0x2d5   : > { %p1643_p3 = pneg %p1642_p5 }
 0x2d7   : > { %1852 = dma.done.wait (%p1643_p3), %s1503_s15, 64  }
 0x2d8   : > { %1854 = vsyncadd (%p1643_p3), %s1503_s15, 4294967232  ;;  %p20_p7 = scmp.ge.s32.totalorder %s1989_s28, 4   ;;  %s2191_s18 = smov %s1861_s19 }
 0x2d9   : > { %s2192_s19 = smov %s1865_s20  ;;  %s2193_s20 = smov %s1999_s6 }
 0x2da   : > { %s2194_s21 = smov %s1989_s28  ;;  %22 = sbr.rel (!%p20_p7) target bundleno = 7 (0x7), region = 97 }
 0x2df   :  { %1508 = vsyncpa [#allocation3], 1 }
 0x2e0   :  { %1510 = vsyncpa [#allocation3 + $0x1], 1 }
 0x2e1   :  { %1511 = vsyncpa [#allocation6], 1 }
 0x2e2   :  { %1512 = vsyncpa [#allocation9], 1 }
 0x2e3   :  { %1513 = vsyncpa [#allocation4], 1 }
 0x2e4   :  { %1515 = vsyncpa [#allocation4 + $0x1], 1 }

</bundles_post_ra>
